<compile_context>
chip_gen: v6e
topology: v6e:2x2x1
jax: 0.10.0
libtpu: 0.0.40
codegen_flags: <defaults>
</compile_context>

<pallas_src>
import functools
import math

import jax
import jax.numpy as jnp
from jax.experimental import pallas as pl
from jax.experimental.pallas import tpu as pltpu

GRID_SIZE = 3
SPLINE_ORDER = 3
GK = GRID_SIZE + SPLINE_ORDER             # B-spline bases per input feature = 6
NGRID = GRID_SIZE + 2 * SPLINE_ORDER + 1  # grid knots per input feature = 10
SCALE_BASE = 1.0
SCALE_SPLINE = 0.5
GRID_RANGE = (-1.0, 1.0)

LANE = 128
SUBLANE = 8


def _round_up(x, m):
    return ((x + m - 1) // m) * m


def kan_layer_kernel(x_ref, grid_ref, rec_ref, wb_ref, ws_ref, o_ref,
                     x_carry, bases_ref):
    """One KANLinear layer per (batch_tile, layer) grid step.

    Grid = (batch_tiles, num_layers); the layer axis is innermost and "arbitrary",
    so the activation carry lives in VMEM scratch across it and layer l+1 weights
    are DMA'd while layer l computes.

    x_ref    : (TB, F)                   input activations (read at l == 0 only)
    grid_ref : (1, NGRID, F)             this layer's per-feature grid knots (f32)
    rec_ref  : (1, SPLINE_ORDER*NGRID, F) 1/(g[t+k]-g[t]) reciprocals (f32)
    wb_ref   : (1, F, F)                 base_weight.T, bf16, zero padded
    ws_ref   : (1, GK*F, F)              scaled spline weight, k-major rows, bf16
    o_ref    : (TB, F)                   written at l == last only
    x_carry  : (TB, F) f32 VMEM scratch  activation carried across layers
    bases_ref: (TB, GK*F) bf16 VMEM scratch, spline-matmul LHS
    """
    l = pl.program_id(1)
    last = pl.num_programs(1) - 1

    @pl.when(l == 0)
    def _():
        x_carry[...] = x_ref[...]

    x = x_carry[...]                              # (TB, F) f32
    f = x.shape[1]

    g = grid_ref[0]                               # (NGRID, F)  — one load per layer
    r = rec_ref[0]                                # (SPLINE_ORDER*NGRID, F)

    # ---- Degree-0 bases: one compare per knot, one subtract per interval.
    # (x >= g[t]) - (x >= g[t+1]) == (x >= g[t]) & (x < g[t+1]) for a sorted grid.
    ge = [(x >= g[t:t + 1, :]).astype(jnp.float32) for t in range(NGRID)]
    b = [ge[t] - ge[t + 1] for t in range(NGRID - 1)]

    # ---- Cox-de Boor recursion; divides replaced by precomputed reciprocals.
    for k in range(1, SPLINE_ORDER + 1):
        row = (k - 1) * NGRID
        nb = []
        for t in range(NGRID - 1 - k):
            g_t = g[t:t + 1, :]
            g_tk1 = g[t + k + 1:t + k + 2, :]
            r_t = r[row + t:row + t + 1, :]
            r_t1 = r[row + t + 1:row + t + 2, :]
            nb.append((x - g_t) * r_t * b[t] + (g_tk1 - x) * r_t1 * b[t + 1])
        b = nb

    # ---- Write the spline-matmul LHS straight into a bf16 VMEM scratch
    #      (k-major layout matching ws rows); no concatenate temp.
    for t in range(GK):
        bases_ref[:, t * f:(t + 1) * f] = b[t].astype(jnp.bfloat16)

    # ---- Base branch: numerically stable SiLU; reciprocal goes to the EUP slot.
    z = jnp.exp(-jnp.abs(x))
    recip = pl.reciprocal(1.0 + z, approx=True)
    sig = jnp.where(x >= 0, recip, z * recip)
    silu_x = (x * sig).astype(jnp.bfloat16)

    # ---- Two bf16 MXU matmuls with f32 accumulation.
    acc = jnp.dot(silu_x, wb_ref[0], preferred_element_type=jnp.float32)
    acc = acc + jnp.dot(bases_ref[...], ws_ref[0], preferred_element_type=jnp.float32)

    x_carry[...] = acc

    @pl.when(l == last)
    def _():
        o_ref[...] = acc


def init_kan_params(key, layers_hidden):
    """Deterministic synthetic parameters matching the module's shapes."""
    h = (GRID_RANGE[1] - GRID_RANGE[0]) / GRID_SIZE
    base_grid = (
        jnp.arange(-SPLINE_ORDER, GRID_SIZE + SPLINE_ORDER + 1, dtype=jnp.float32) * h
        + GRID_RANGE[0]
    )  # (NGRID,)
    params = []
    for in_f, out_f in zip(layers_hidden, layers_hidden[1:]):
        key, k1, k2, k3 = jax.random.split(key, 4)
        grid = jnp.tile(base_grid[None, :], (in_f, 1))                 # (in, NGRID)
        base_weight = (
            jax.random.uniform(k1, (out_f, in_f), minval=-1.0, maxval=1.0)
            * (SCALE_BASE / math.sqrt(in_f))
        )                                                              # (out, in)
        spline_weight = (
            jax.random.normal(k2, (out_f, in_f, GK), dtype=jnp.float32) * 0.1
        )                                                              # (out, in, GK)
        spline_scaler = (
            jax.random.uniform(k3, (out_f, in_f), minval=-1.0, maxval=1.0)
            * (SCALE_SPLINE / math.sqrt(in_f))
        )                                                              # (out, in)
        params.append(
            dict(
                grid=grid,
                base_weight=base_weight,
                spline_weight=spline_weight,
                spline_scaler=spline_scaler,
            )
        )
    return params


def prepare_kan_params(params, layers_hidden):
    """One-time host-side packing (hoisted out of the forward pass).

    Pads feature dims to a lane-dense width, folds spline_scaler into
    spline_weight, flattens spline weights to the single-matmul (k-major) layout,
    casts matmul weights to bf16 and precomputes safe Cox-de Boor reciprocals.
    """
    num_layers = len(params)
    f_pad = _round_up(max(layers_hidden), LANE)
    # TODO(synk): for strongly non-uniform layer widths (> one 128-lane tile apart),
    # per-layer padding / separate pallas_calls would avoid zero-padded MXU work.

    h = (GRID_RANGE[1] - GRID_RANGE[0]) / GRID_SIZE
    base_grid = (
        jnp.arange(-SPLINE_ORDER, GRID_SIZE + SPLINE_ORDER + 1, dtype=jnp.float32) * h
        + GRID_RANGE[0]
    )

    grid_all = jnp.zeros((num_layers, NGRID, f_pad), jnp.float32)
    rec_all = jnp.zeros((num_layers, SPLINE_ORDER * NGRID, f_pad), jnp.float32)
    wb_all = jnp.zeros((num_layers, f_pad, f_pad), jnp.bfloat16)
    ws_all = jnp.zeros((num_layers, GK * f_pad, f_pad), jnp.bfloat16)

    for l, p in enumerate(params):
        out_f, in_f = p["base_weight"].shape

        # Padded features reuse the uniform base grid so reciprocals stay finite;
        # their weights are exactly zero so they contribute nothing.
        g_pad = jnp.tile(base_grid[None, :], (f_pad, 1))               # (f_pad, NGRID)
        g_pad = g_pad.at[:in_f, :].set(p["grid"])
        grid_all = grid_all.at[l].set(g_pad.T)

        for k in range(1, SPLINE_ORDER + 1):
            for t in range(NGRID - k):
                denom = g_pad[:, t + k] - g_pad[:, t]                  # (f_pad,)
                safe = jnp.where(
                    denom == 0, 0.0, 1.0 / jnp.where(denom == 0, 1.0, denom)
                )
                rec_all = rec_all.at[l, (k - 1) * NGRID + t, :].set(safe)

        wb_all = wb_all.at[l, :in_f, :out_f].set(
            p["base_weight"].T.astype(jnp.bfloat16)
        )

        scaled = p["spline_weight"] * p["spline_scaler"][..., None]    # (out, in, GK)
        ws_t = jnp.transpose(scaled, (2, 1, 0))                        # (GK, in, out)
        ws_pad = (
            jnp.zeros((GK, f_pad, f_pad), jnp.float32)
            .at[:, :in_f, :out_f]
            .set(ws_t)
        )
        ws_all = ws_all.at[l].set(
            ws_pad.reshape(GK * f_pad, f_pad).astype(jnp.bfloat16)
        )

    return dict(
        grid=grid_all,
        rec=rec_all,
        wb=wb_all,
        ws=ws_all,
        f_pad=f_pad,
        num_layers=num_layers,
        in_features=layers_hidden[0],
        out_features=layers_hidden[-1],
    )


def kan_forward(prepped, x):
    """KAN.forward: all KANLinear layers in one Pallas call, weights streamed
    along an inner layer grid axis."""
    B, in_f = x.shape
    f_pad = prepped["f_pad"]
    num_layers = prepped["num_layers"]

    # Batch tiling: lane-dense features, sublane-aligned batch tiles; batch axis
    # is "parallel" so megacore / multi-TC can split it.
    if B >= 256:
        tb = 256
    elif B >= LANE:
        tb = LANE
    else:
        tb = _round_up(B, SUBLANE)
    b_pad = _round_up(B, tb)
    x_pad = jnp.zeros((b_pad, f_pad), jnp.float32).at[:B, :in_f].set(x)

    # VMEM budget: double-buffered per-layer weights + IO tiles + scratch + margin.
    w_bytes = (
        NGRID * f_pad * 4
        + SPLINE_ORDER * NGRID * f_pad * 4
        + f_pad * f_pad * 2
        + GK * f_pad * f_pad * 2
    )
    io_bytes = 2 * tb * f_pad * 4
    scratch_bytes = tb * f_pad * 4 + tb * GK * f_pad * 2
    vmem_limit = int(
        min(max(2 * (w_bytes + io_bytes) + scratch_bytes + (8 << 20), 32 << 20),
            60 << 20)
    )

    out = pl.pallas_call(
        kan_layer_kernel,
        out_shape=jax.ShapeDtypeStruct((b_pad, f_pad), jnp.float32),
        grid=(b_pad // tb, num_layers),
        in_specs=[
            pl.BlockSpec((tb, f_pad), lambda i, l: (i, 0)),
            pl.BlockSpec((1, NGRID, f_pad), lambda i, l: (l, 0, 0)),
            pl.BlockSpec((1, SPLINE_ORDER * NGRID, f_pad), lambda i, l: (l, 0, 0)),
            pl.BlockSpec((1, f_pad, f_pad), lambda i, l: (l, 0, 0)),
            pl.BlockSpec((1, GK * f_pad, f_pad), lambda i, l: (l, 0, 0)),
        ],
        out_specs=pl.BlockSpec((tb, f_pad), lambda i, l: (i, 0)),
        scratch_shapes=[
            pltpu.VMEM((tb, f_pad), jnp.float32),        # activation carry
            pltpu.VMEM((tb, GK * f_pad), jnp.bfloat16),  # spline-matmul LHS
        ],
        compiler_params=pltpu.CompilerParams(
            dimension_semantics=("parallel", "arbitrary"),
            vmem_limit_bytes=vmem_limit,
        ),
    )(x_pad, prepped["grid"], prepped["rec"], prepped["wb"], prepped["ws"])

    return out[:B, : prepped["out_features"]]


def kan_forward_ref(params, x):
    """Pure-JAX f32 reference (efficient-KAN math) for correctness."""
    for p in params:
        g = p["grid"]                              # (in, NGRID)
        xb = x[:, :, None]                         # (B, in, 1)
        bases = jnp.logical_and(xb >= g[None, :, :-1], xb < g[None, :, 1:]).astype(
            jnp.float32
        )
        for k in range(1, SPLINE_ORDER + 1):
            bases = (
                (xb - g[None, :, : -(k + 1)])
                / (g[None, :, k:-1] - g[None, :, : -(k + 1)])
                * bases[:, :, :-1]
            ) + (
                (g[None, :, k + 1 :] - xb)
                / (g[None, :, k + 1 :] - g[None, :, 1:-k])
                * bases[:, :, 1:]
            )
        base_out = jax.nn.silu(x) @ p["base_weight"].T
        scaled = p["spline_weight"] * p["spline_scaler"][..., None]
        spline_out = bases.reshape(x.shape[0], -1) @ scaled.reshape(
            scaled.shape[0], -1
        ).T
        x = base_out + spline_out
    return x


# TODO(synk): KAN.regularization_loss is a training-time regularizer (not part of
# the forward pass) and is not implemented as a kernel.

if __name__ == "__main__":
    key = jax.random.PRNGKey(0)
    layers_hidden = [16, 32, 8]
    batch = 8

    pkey, xkey = jax.random.split(key)
    params = init_kan_params(pkey, layers_hidden)
    prepped = prepare_kan_params(params, layers_hidden)   # one-time weight prep

    x = jax.random.uniform(
        xkey, (batch, layers_hidden[0]), minval=-1.0, maxval=1.0, dtype=jnp.float32
    )

    out = jax.block_until_ready(kan_forward(prepped, x))
    ref = jax.block_until_ready(kan_forward_ref(params, x))

    assert out.shape == (batch, layers_hidden[-1])
    # Tolerance loosened vs the f32 reference because the kernel's matmuls run in
    # bf16 (f32 accumulation) and the sigmoid uses the EUP approx reciprocal.
    assert jnp.allclose(out, ref, atol=5e-2, rtol=5e-2), (
        f"max abs err {jnp.max(jnp.abs(out - ref))}"
    )
    print("KERNEL_OK")
</pallas_src>

<mosaic_0001>
module attributes {stable_mosaic.version = 11 : i64} {
  func.func @kan_layer_kernel(%arg0: i32, %arg1: i32, %arg2: memref<8x128xf32, #tpu.memory_space<vmem>>, %arg3: memref<1x10x128xf32, #tpu.memory_space<vmem>>, %arg4: memref<1x30x128xf32, #tpu.memory_space<vmem>>, %arg5: memref<1x128x128xbf16, #tpu.memory_space<vmem>>, %arg6: memref<1x768x128xbf16, #tpu.memory_space<vmem>>, %arg7: memref<8x128xf32, #tpu.memory_space<vmem>>, %arg8: memref<8x128xf32, #tpu.memory_space<vmem>>, %arg9: memref<8x768xbf16, #tpu.memory_space<vmem>>) attributes {dimension_semantics = [#tpu.dimension_semantics<parallel>, #tpu.dimension_semantics<arbitrary>], iteration_bounds = array<i64: 1, 2>, scalar_prefetch = 0 : i64, scratch_operands = 2 : i64, tpu.core_type = #tpu.core_type<tc>, window_params = [{transform_indices = @transform_0, window_bounds = array<i64: 8, 128>}, {transform_indices = @transform_1, window_bounds = array<i64: 1, 10, 128>}, {transform_indices = @transform_2, window_bounds = array<i64: 1, 30, 128>}, {transform_indices = @transform_3, window_bounds = array<i64: 1, 128, 128>}, {transform_indices = @transform_4, window_bounds = array<i64: 1, 768, 128>}, {transform_indices = @transform_5, window_bounds = array<i64: 8, 128>}]} {
    %c0_i32 = arith.constant 0 : i32
    %0 = arith.cmpi eq, %arg1, %c0_i32 : i32
    %1 = arith.extui %0 : i1 to i32
    %c0_i32_0 = arith.constant 0 : i32
    %2 = arith.cmpi ne, %1, %c0_i32_0 : i32
    scf.if %2 {
      %c0_30 = arith.constant 0 : index
      %c0_31 = arith.constant 0 : index
      %419 = vector.load %arg2[%c0_30, %c0_31] : memref<8x128xf32, #tpu.memory_space<vmem>>, vector<8x128xf32>
      %c0_32 = arith.constant 0 : index
      %c0_33 = arith.constant 0 : index
      %420 = vector.load %arg8[%c0_32, %c0_33] : memref<8x128xf32, #tpu.memory_space<vmem>>, vector<8x128xf32>
      tpu.vector_store %arg8[%c0_32, %c0_33], %419 {strides = array<i32>} : memref<8x128xf32, #tpu.memory_space<vmem>>, vector<8x128xf32>,
    } else {
    }
    %c0 = arith.constant 0 : index
    %c0_1 = arith.constant 0 : index
    %3 = vector.load %arg8[%c0, %c0_1] : memref<8x128xf32, #tpu.memory_space<vmem>>, vector<8x128xf32>
    %c0_2 = arith.constant 0 : index
    %c0_3 = arith.constant 0 : index
    %c0_4 = arith.constant 0 : index
    %4 = vector.load %arg3[%c0_2, %c0_3, %c0_4] : memref<1x10x128xf32, #tpu.memory_space<vmem>>, vector<1x10x128xf32>
    %5 = vector.shape_cast %4 : vector<1x10x128xf32> to vector<10x128xf32>
    %c0_5 = arith.constant 0 : index
    %c0_6 = arith.constant 0 : index
    %c0_7 = arith.constant 0 : index
    %6 = vector.load %arg4[%c0_5, %c0_6, %c0_7] : memref<1x30x128xf32, #tpu.memory_space<vmem>>, vector<1x30x128xf32>
    %7 = vector.shape_cast %6 : vector<1x30x128xf32> to vector<30x128xf32>
    %8 = vector.extract_strided_slice %5 {offsets = [0, 0], sizes = [1, 128], strides = [1, 1]} : vector<10x128xf32> to vector<1x128xf32>
    %9 = vector.broadcast %8 : vector<1x128xf32> to vector<8x128xf32>
    %10 = arith.cmpf oge, %3, %9 : vector<8x128xf32>
    %11 = arith.extui %10 : vector<8x128xi1> to vector<8x128xi32>
    %12 = arith.sitofp %11 : vector<8x128xi32> to vector<8x128xf32>
    %13 = vector.extract_strided_slice %5 {offsets = [1, 0], sizes = [1, 128], strides = [1, 1]} : vector<10x128xf32> to vector<1x128xf32>
    %14 = vector.broadcast %13 : vector<1x128xf32> to vector<8x128xf32>
    %15 = arith.cmpf oge, %3, %14 : vector<8x128xf32>
    %16 = arith.extui %15 : vector<8x128xi1> to vector<8x128xi32>
    %17 = arith.sitofp %16 : vector<8x128xi32> to vector<8x128xf32>
    %18 = vector.extract_strided_slice %5 {offsets = [2, 0], sizes = [1, 128], strides = [1, 1]} : vector<10x128xf32> to vector<1x128xf32>
    %19 = vector.broadcast %18 : vector<1x128xf32> to vector<8x128xf32>
    %20 = arith.cmpf oge, %3, %19 : vector<8x128xf32>
    %21 = arith.extui %20 : vector<8x128xi1> to vector<8x128xi32>
    %22 = arith.sitofp %21 : vector<8x128xi32> to vector<8x128xf32>
    %23 = vector.extract_strided_slice %5 {offsets = [3, 0], sizes = [1, 128], strides = [1, 1]} : vector<10x128xf32> to vector<1x128xf32>
    %24 = vector.broadcast %23 : vector<1x128xf32> to vector<8x128xf32>
    %25 = arith.cmpf oge, %3, %24 : vector<8x128xf32>
    %26 = arith.extui %25 : vector<8x128xi1> to vector<8x128xi32>
    %27 = arith.sitofp %26 : vector<8x128xi32> to vector<8x128xf32>
    %28 = vector.extract_strided_slice %5 {offsets = [4, 0], sizes = [1, 128], strides = [1, 1]} : vector<10x128xf32> to vector<1x128xf32>
    %29 = vector.broadcast %28 : vector<1x128xf32> to vector<8x128xf32>
    %30 = arith.cmpf oge, %3, %29 : vector<8x128xf32>
    %31 = arith.extui %30 : vector<8x128xi1> to vector<8x128xi32>
    %32 = arith.sitofp %31 : vector<8x128xi32> to vector<8x128xf32>
    %33 = vector.extract_strided_slice %5 {offsets = [5, 0], sizes = [1, 128], strides = [1, 1]} : vector<10x128xf32> to vector<1x128xf32>
    %34 = vector.broadcast %33 : vector<1x128xf32> to vector<8x128xf32>
    %35 = arith.cmpf oge, %3, %34 : vector<8x128xf32>
    %36 = arith.extui %35 : vector<8x128xi1> to vector<8x128xi32>
    %37 = arith.sitofp %36 : vector<8x128xi32> to vector<8x128xf32>
    %38 = vector.extract_strided_slice %5 {offsets = [6, 0], sizes = [1, 128], strides = [1, 1]} : vector<10x128xf32> to vector<1x128xf32>
    %39 = vector.broadcast %38 : vector<1x128xf32> to vector<8x128xf32>
    %40 = arith.cmpf oge, %3, %39 : vector<8x128xf32>
    %41 = arith.extui %40 : vector<8x128xi1> to vector<8x128xi32>
    %42 = arith.sitofp %41 : vector<8x128xi32> to vector<8x128xf32>
    %43 = vector.extract_strided_slice %5 {offsets = [7, 0], sizes = [1, 128], strides = [1, 1]} : vector<10x128xf32> to vector<1x128xf32>
    %44 = vector.broadcast %43 : vector<1x128xf32> to vector<8x128xf32>
    %45 = arith.cmpf oge, %3, %44 : vector<8x128xf32>
    %46 = arith.extui %45 : vector<8x128xi1> to vector<8x128xi32>
    %47 = arith.sitofp %46 : vector<8x128xi32> to vector<8x128xf32>
    %48 = vector.extract_strided_slice %5 {offsets = [8, 0], sizes = [1, 128], strides = [1, 1]} : vector<10x128xf32> to vector<1x128xf32>
    %49 = vector.broadcast %48 : vector<1x128xf32> to vector<8x128xf32>
    %50 = arith.cmpf oge, %3, %49 : vector<8x128xf32>
    %51 = arith.extui %50 : vector<8x128xi1> to vector<8x128xi32>
    %52 = arith.sitofp %51 : vector<8x128xi32> to vector<8x128xf32>
    %53 = vector.extract_strided_slice %5 {offsets = [9, 0], sizes = [1, 128], strides = [1, 1]} : vector<10x128xf32> to vector<1x128xf32>
    %54 = vector.broadcast %53 : vector<1x128xf32> to vector<8x128xf32>
    %55 = arith.cmpf oge, %3, %54 : vector<8x128xf32>
    %56 = arith.extui %55 : vector<8x128xi1> to vector<8x128xi32>
    %57 = arith.sitofp %56 : vector<8x128xi32> to vector<8x128xf32>
    %58 = arith.subf %12, %17 : vector<8x128xf32>
    %59 = arith.subf %17, %22 : vector<8x128xf32>
    %60 = arith.subf %22, %27 : vector<8x128xf32>
    %61 = arith.subf %27, %32 : vector<8x128xf32>
    %62 = arith.subf %32, %37 : vector<8x128xf32>
    %63 = arith.subf %37, %42 : vector<8x128xf32>
    %64 = arith.subf %42, %47 : vector<8x128xf32>
    %65 = arith.subf %47, %52 : vector<8x128xf32>
    %66 = arith.subf %52, %57 : vector<8x128xf32>
    %67 = vector.extract_strided_slice %5 {offsets = [0, 0], sizes = [1, 128], strides = [1, 1]} : vector<10x128xf32> to vector<1x128xf32>
    %68 = vector.extract_strided_slice %5 {offsets = [2, 0], sizes = [1, 128], strides = [1, 1]} : vector<10x128xf32> to vector<1x128xf32>
    %69 = vector.extract_strided_slice %7 {offsets = [0, 0], sizes = [1, 128], strides = [1, 1]} : vector<30x128xf32> to vector<1x128xf32>
    %70 = vector.extract_strided_slice %7 {offsets = [1, 0], sizes = [1, 128], strides = [1, 1]} : vector<30x128xf32> to vector<1x128xf32>
    %71 = vector.broadcast %67 : vector<1x128xf32> to vector<8x128xf32>
    %72 = arith.subf %3, %71 : vector<8x128xf32>
    %73 = vector.broadcast %69 : vector<1x128xf32> to vector<8x128xf32>
    %74 = arith.mulf %72, %73 : vector<8x128xf32>
    %75 = arith.mulf %74, %58 : vector<8x128xf32>
    %76 = vector.broadcast %68 : vector<1x128xf32> to vector<8x128xf32>
    %77 = arith.subf %76, %3 : vector<8x128xf32>
    %78 = vector.broadcast %70 : vector<1x128xf32> to vector<8x128xf32>
    %79 = arith.mulf %77, %78 : vector<8x128xf32>
    %80 = arith.mulf %79, %59 : vector<8x128xf32>
    %81 = arith.addf %75, %80 : vector<8x128xf32>
    %82 = vector.extract_strided_slice %5 {offsets = [1, 0], sizes = [1, 128], strides = [1, 1]} : vector<10x128xf32> to vector<1x128xf32>
    %83 = vector.extract_strided_slice %5 {offsets = [3, 0], sizes = [1, 128], strides = [1, 1]} : vector<10x128xf32> to vector<1x128xf32>
    %84 = vector.extract_strided_slice %7 {offsets = [1, 0], sizes = [1, 128], strides = [1, 1]} : vector<30x128xf32> to vector<1x128xf32>
    %85 = vector.extract_strided_slice %7 {offsets = [2, 0], sizes = [1, 128], strides = [1, 1]} : vector<30x128xf32> to vector<1x128xf32>
    %86 = vector.broadcast %82 : vector<1x128xf32> to vector<8x128xf32>
    %87 = arith.subf %3, %86 : vector<8x128xf32>
    %88 = vector.broadcast %84 : vector<1x128xf32> to vector<8x128xf32>
    %89 = arith.mulf %87, %88 : vector<8x128xf32>
    %90 = arith.mulf %89, %59 : vector<8x128xf32>
    %91 = vector.broadcast %83 : vector<1x128xf32> to vector<8x128xf32>
    %92 = arith.subf %91, %3 : vector<8x128xf32>
    %93 = vector.broadcast %85 : vector<1x128xf32> to vector<8x128xf32>
    %94 = arith.mulf %92, %93 : vector<8x128xf32>
    %95 = arith.mulf %94, %60 : vector<8x128xf32>
    %96 = arith.addf %90, %95 : vector<8x128xf32>
    %97 = vector.extract_strided_slice %5 {offsets = [2, 0], sizes = [1, 128], strides = [1, 1]} : vector<10x128xf32> to vector<1x128xf32>
    %98 = vector.extract_strided_slice %5 {offsets = [4, 0], sizes = [1, 128], strides = [1, 1]} : vector<10x128xf32> to vector<1x128xf32>
    %99 = vector.extract_strided_slice %7 {offsets = [2, 0], sizes = [1, 128], strides = [1, 1]} : vector<30x128xf32> to vector<1x128xf32>
    %100 = vector.extract_strided_slice %7 {offsets = [3, 0], sizes = [1, 128], strides = [1, 1]} : vector<30x128xf32> to vector<1x128xf32>
    %101 = vector.broadcast %97 : vector<1x128xf32> to vector<8x128xf32>
    %102 = arith.subf %3, %101 : vector<8x128xf32>
    %103 = vector.broadcast %99 : vector<1x128xf32> to vector<8x128xf32>
    %104 = arith.mulf %102, %103 : vector<8x128xf32>
    %105 = arith.mulf %104, %60 : vector<8x128xf32>
    %106 = vector.broadcast %98 : vector<1x128xf32> to vector<8x128xf32>
    %107 = arith.subf %106, %3 : vector<8x128xf32>
    %108 = vector.broadcast %100 : vector<1x128xf32> to vector<8x128xf32>
    %109 = arith.mulf %107, %108 : vector<8x128xf32>
    %110 = arith.mulf %109, %61 : vector<8x128xf32>
    %111 = arith.addf %105, %110 : vector<8x128xf32>
    %112 = vector.extract_strided_slice %5 {offsets = [3, 0], sizes = [1, 128], strides = [1, 1]} : vector<10x128xf32> to vector<1x128xf32>
    %113 = vector.extract_strided_slice %5 {offsets = [5, 0], sizes = [1, 128], strides = [1, 1]} : vector<10x128xf32> to vector<1x128xf32>
    %114 = vector.extract_strided_slice %7 {offsets = [3, 0], sizes = [1, 128], strides = [1, 1]} : vector<30x128xf32> to vector<1x128xf32>
    %115 = vector.extract_strided_slice %7 {offsets = [4, 0], sizes = [1, 128], strides = [1, 1]} : vector<30x128xf32> to vector<1x128xf32>
    %116 = vector.broadcast %112 : vector<1x128xf32> to vector<8x128xf32>
    %117 = arith.subf %3, %116 : vector<8x128xf32>
    %118 = vector.broadcast %114 : vector<1x128xf32> to vector<8x128xf32>
    %119 = arith.mulf %117, %118 : vector<8x128xf32>
    %120 = arith.mulf %119, %61 : vector<8x128xf32>
    %121 = vector.broadcast %113 : vector<1x128xf32> to vector<8x128xf32>
    %122 = arith.subf %121, %3 : vector<8x128xf32>
    %123 = vector.broadcast %115 : vector<1x128xf32> to vector<8x128xf32>
    %124 = arith.mulf %122, %123 : vector<8x128xf32>
    %125 = arith.mulf %124, %62 : vector<8x128xf32>
    %126 = arith.addf %120, %125 : vector<8x128xf32>
    %127 = vector.extract_strided_slice %5 {offsets = [4, 0], sizes = [1, 128], strides = [1, 1]} : vector<10x128xf32> to vector<1x128xf32>
    %128 = vector.extract_strided_slice %5 {offsets = [6, 0], sizes = [1, 128], strides = [1, 1]} : vector<10x128xf32> to vector<1x128xf32>
    %129 = vector.extract_strided_slice %7 {offsets = [4, 0], sizes = [1, 128], strides = [1, 1]} : vector<30x128xf32> to vector<1x128xf32>
    %130 = vector.extract_strided_slice %7 {offsets = [5, 0], sizes = [1, 128], strides = [1, 1]} : vector<30x128xf32> to vector<1x128xf32>
    %131 = vector.broadcast %127 : vector<1x128xf32> to vector<8x128xf32>
    %132 = arith.subf %3, %131 : vector<8x128xf32>
    %133 = vector.broadcast %129 : vector<1x128xf32> to vector<8x128xf32>
    %134 = arith.mulf %132, %133 : vector<8x128xf32>
    %135 = arith.mulf %134, %62 : vector<8x128xf32>
    %136 = vector.broadcast %128 : vector<1x128xf32> to vector<8x128xf32>
    %137 = arith.subf %136, %3 : vector<8x128xf32>
    %138 = vector.broadcast %130 : vector<1x128xf32> to vector<8x128xf32>
    %139 = arith.mulf %137, %138 : vector<8x128xf32>
    %140 = arith.mulf %139, %63 : vector<8x128xf32>
    %141 = arith.addf %135, %140 : vector<8x128xf32>
    %142 = vector.extract_strided_slice %5 {offsets = [5, 0], sizes = [1, 128], strides = [1, 1]} : vector<10x128xf32> to vector<1x128xf32>
    %143 = vector.extract_strided_slice %5 {offsets = [7, 0], sizes = [1, 128], strides = [1, 1]} : vector<10x128xf32> to vector<1x128xf32>
    %144 = vector.extract_strided_slice %7 {offsets = [5, 0], sizes = [1, 128], strides = [1, 1]} : vector<30x128xf32> to vector<1x128xf32>
    %145 = vector.extract_strided_slice %7 {offsets = [6, 0], sizes = [1, 128], strides = [1, 1]} : vector<30x128xf32> to vector<1x128xf32>
    %146 = vector.broadcast %142 : vector<1x128xf32> to vector<8x128xf32>
    %147 = arith.subf %3, %146 : vector<8x128xf32>
    %148 = vector.broadcast %144 : vector<1x128xf32> to vector<8x128xf32>
    %149 = arith.mulf %147, %148 : vector<8x128xf32>
    %150 = arith.mulf %149, %63 : vector<8x128xf32>
    %151 = vector.broadcast %143 : vector<1x128xf32> to vector<8x128xf32>
    %152 = arith.subf %151, %3 : vector<8x128xf32>
    %153 = vector.broadcast %145 : vector<1x128xf32> to vector<8x128xf32>
    %154 = arith.mulf %152, %153 : vector<8x128xf32>
    %155 = arith.mulf %154, %64 : vector<8x128xf32>
    %156 = arith.addf %150, %155 : vector<8x128xf32>
    %157 = vector.extract_strided_slice %5 {offsets = [6, 0], sizes = [1, 128], strides = [1, 1]} : vector<10x128xf32> to vector<1x128xf32>
    %158 = vector.extract_strided_slice %5 {offsets = [8, 0], sizes = [1, 128], strides = [1, 1]} : vector<10x128xf32> to vector<1x128xf32>
    %159 = vector.extract_strided_slice %7 {offsets = [6, 0], sizes = [1, 128], strides = [1, 1]} : vector<30x128xf32> to vector<1x128xf32>
    %160 = vector.extract_strided_slice %7 {offsets = [7, 0], sizes = [1, 128], strides = [1, 1]} : vector<30x128xf32> to vector<1x128xf32>
    %161 = vector.broadcast %157 : vector<1x128xf32> to vector<8x128xf32>
    %162 = arith.subf %3, %161 : vector<8x128xf32>
    %163 = vector.broadcast %159 : vector<1x128xf32> to vector<8x128xf32>
    %164 = arith.mulf %162, %163 : vector<8x128xf32>
    %165 = arith.mulf %164, %64 : vector<8x128xf32>
    %166 = vector.broadcast %158 : vector<1x128xf32> to vector<8x128xf32>
    %167 = arith.subf %166, %3 : vector<8x128xf32>
    %168 = vector.broadcast %160 : vector<1x128xf32> to vector<8x128xf32>
    %169 = arith.mulf %167, %168 : vector<8x128xf32>
    %170 = arith.mulf %169, %65 : vector<8x128xf32>
    %171 = arith.addf %165, %170 : vector<8x128xf32>
    %172 = vector.extract_strided_slice %5 {offsets = [7, 0], sizes = [1, 128], strides = [1, 1]} : vector<10x128xf32> to vector<1x128xf32>
    %173 = vector.extract_strided_slice %5 {offsets = [9, 0], sizes = [1, 128], strides = [1, 1]} : vector<10x128xf32> to vector<1x128xf32>
    %174 = vector.extract_strided_slice %7 {offsets = [7, 0], sizes = [1, 128], strides = [1, 1]} : vector<30x128xf32> to vector<1x128xf32>
    %175 = vector.extract_strided_slice %7 {offsets = [8, 0], sizes = [1, 128], strides = [1, 1]} : vector<30x128xf32> to vector<1x128xf32>
    %176 = vector.broadcast %172 : vector<1x128xf32> to vector<8x128xf32>
    %177 = arith.subf %3, %176 : vector<8x128xf32>
    %178 = vector.broadcast %174 : vector<1x128xf32> to vector<8x128xf32>
    %179 = arith.mulf %177, %178 : vector<8x128xf32>
    %180 = arith.mulf %179, %65 : vector<8x128xf32>
    %181 = vector.broadcast %173 : vector<1x128xf32> to vector<8x128xf32>
    %182 = arith.subf %181, %3 : vector<8x128xf32>
    %183 = vector.broadcast %175 : vector<1x128xf32> to vector<8x128xf32>
    %184 = arith.mulf %182, %183 : vector<8x128xf32>
    %185 = arith.mulf %184, %66 : vector<8x128xf32>
    %186 = arith.addf %180, %185 : vector<8x128xf32>
    %187 = vector.extract_strided_slice %5 {offsets = [0, 0], sizes = [1, 128], strides = [1, 1]} : vector<10x128xf32> to vector<1x128xf32>
    %188 = vector.extract_strided_slice %5 {offsets = [3, 0], sizes = [1, 128], strides = [1, 1]} : vector<10x128xf32> to vector<1x128xf32>
    %189 = vector.extract_strided_slice %7 {offsets = [10, 0], sizes = [1, 128], strides = [1, 1]} : vector<30x128xf32> to vector<1x128xf32>
    %190 = vector.extract_strided_slice %7 {offsets = [11, 0], sizes = [1, 128], strides = [1, 1]} : vector<30x128xf32> to vector<1x128xf32>
    %191 = vector.broadcast %187 : vector<1x128xf32> to vector<8x128xf32>
    %192 = arith.subf %3, %191 : vector<8x128xf32>
    %193 = vector.broadcast %189 : vector<1x128xf32> to vector<8x128xf32>
    %194 = arith.mulf %192, %193 : vector<8x128xf32>
    %195 = arith.mulf %194, %81 : vector<8x128xf32>
    %196 = vector.broadcast %188 : vector<1x128xf32> to vector<8x128xf32>
    %197 = arith.subf %196, %3 : vector<8x128xf32>
    %198 = vector.broadcast %190 : vector<1x128xf32> to vector<8x128xf32>
    %199 = arith.mulf %197, %198 : vector<8x128xf32>
    %200 = arith.mulf %199, %96 : vector<8x128xf32>
    %201 = arith.addf %195, %200 : vector<8x128xf32>
    %202 = vector.extract_strided_slice %5 {offsets = [1, 0], sizes = [1, 128], strides = [1, 1]} : vector<10x128xf32> to vector<1x128xf32>
    %203 = vector.extract_strided_slice %5 {offsets = [4, 0], sizes = [1, 128], strides = [1, 1]} : vector<10x128xf32> to vector<1x128xf32>
    %204 = vector.extract_strided_slice %7 {offsets = [11, 0], sizes = [1, 128], strides = [1, 1]} : vector<30x128xf32> to vector<1x128xf32>
    %205 = vector.extract_strided_slice %7 {offsets = [12, 0], sizes = [1, 128], strides = [1, 1]} : vector<30x128xf32> to vector<1x128xf32>
    %206 = vector.broadcast %202 : vector<1x128xf32> to vector<8x128xf32>
    %207 = arith.subf %3, %206 : vector<8x128xf32>
    %208 = vector.broadcast %204 : vector<1x128xf32> to vector<8x128xf32>
    %209 = arith.mulf %207, %208 : vector<8x128xf32>
    %210 = arith.mulf %209, %96 : vector<8x128xf32>
    %211 = vector.broadcast %203 : vector<1x128xf32> to vector<8x128xf32>
    %212 = arith.subf %211, %3 : vector<8x128xf32>
    %213 = vector.broadcast %205 : vector<1x128xf32> to vector<8x128xf32>
    %214 = arith.mulf %212, %213 : vector<8x128xf32>
    %215 = arith.mulf %214, %111 : vector<8x128xf32>
    %216 = arith.addf %210, %215 : vector<8x128xf32>
    %217 = vector.extract_strided_slice %5 {offsets = [2, 0], sizes = [1, 128], strides = [1, 1]} : vector<10x128xf32> to vector<1x128xf32>
    %218 = vector.extract_strided_slice %5 {offsets = [5, 0], sizes = [1, 128], strides = [1, 1]} : vector<10x128xf32> to vector<1x128xf32>
    %219 = vector.extract_strided_slice %7 {offsets = [12, 0], sizes = [1, 128], strides = [1, 1]} : vector<30x128xf32> to vector<1x128xf32>
    %220 = vector.extract_strided_slice %7 {offsets = [13, 0], sizes = [1, 128], strides = [1, 1]} : vector<30x128xf32> to vector<1x128xf32>
    %221 = vector.broadcast %217 : vector<1x128xf32> to vector<8x128xf32>
    %222 = arith.subf %3, %221 : vector<8x128xf32>
    %223 = vector.broadcast %219 : vector<1x128xf32> to vector<8x128xf32>
    %224 = arith.mulf %222, %223 : vector<8x128xf32>
    %225 = arith.mulf %224, %111 : vector<8x128xf32>
    %226 = vector.broadcast %218 : vector<1x128xf32> to vector<8x128xf32>
    %227 = arith.subf %226, %3 : vector<8x128xf32>
    %228 = vector.broadcast %220 : vector<1x128xf32> to vector<8x128xf32>
    %229 = arith.mulf %227, %228 : vector<8x128xf32>
    %230 = arith.mulf %229, %126 : vector<8x128xf32>
    %231 = arith.addf %225, %230 : vector<8x128xf32>
    %232 = vector.extract_strided_slice %5 {offsets = [3, 0], sizes = [1, 128], strides = [1, 1]} : vector<10x128xf32> to vector<1x128xf32>
    %233 = vector.extract_strided_slice %5 {offsets = [6, 0], sizes = [1, 128], strides = [1, 1]} : vector<10x128xf32> to vector<1x128xf32>
    %234 = vector.extract_strided_slice %7 {offsets = [13, 0], sizes = [1, 128], strides = [1, 1]} : vector<30x128xf32> to vector<1x128xf32>
    %235 = vector.extract_strided_slice %7 {offsets = [14, 0], sizes = [1, 128], strides = [1, 1]} : vector<30x128xf32> to vector<1x128xf32>
    %236 = vector.broadcast %232 : vector<1x128xf32> to vector<8x128xf32>
    %237 = arith.subf %3, %236 : vector<8x128xf32>
    %238 = vector.broadcast %234 : vector<1x128xf32> to vector<8x128xf32>
    %239 = arith.mulf %237, %238 : vector<8x128xf32>
    %240 = arith.mulf %239, %126 : vector<8x128xf32>
    %241 = vector.broadcast %233 : vector<1x128xf32> to vector<8x128xf32>
    %242 = arith.subf %241, %3 : vector<8x128xf32>
    %243 = vector.broadcast %235 : vector<1x128xf32> to vector<8x128xf32>
    %244 = arith.mulf %242, %243 : vector<8x128xf32>
    %245 = arith.mulf %244, %141 : vector<8x128xf32>
    %246 = arith.addf %240, %245 : vector<8x128xf32>
    %247 = vector.extract_strided_slice %5 {offsets = [4, 0], sizes = [1, 128], strides = [1, 1]} : vector<10x128xf32> to vector<1x128xf32>
    %248 = vector.extract_strided_slice %5 {offsets = [7, 0], sizes = [1, 128], strides = [1, 1]} : vector<10x128xf32> to vector<1x128xf32>
    %249 = vector.extract_strided_slice %7 {offsets = [14, 0], sizes = [1, 128], strides = [1, 1]} : vector<30x128xf32> to vector<1x128xf32>
    %250 = vector.extract_strided_slice %7 {offsets = [15, 0], sizes = [1, 128], strides = [1, 1]} : vector<30x128xf32> to vector<1x128xf32>
    %251 = vector.broadcast %247 : vector<1x128xf32> to vector<8x128xf32>
    %252 = arith.subf %3, %251 : vector<8x128xf32>
    %253 = vector.broadcast %249 : vector<1x128xf32> to vector<8x128xf32>
    %254 = arith.mulf %252, %253 : vector<8x128xf32>
    %255 = arith.mulf %254, %141 : vector<8x128xf32>
    %256 = vector.broadcast %248 : vector<1x128xf32> to vector<8x128xf32>
    %257 = arith.subf %256, %3 : vector<8x128xf32>
    %258 = vector.broadcast %250 : vector<1x128xf32> to vector<8x128xf32>
    %259 = arith.mulf %257, %258 : vector<8x128xf32>
    %260 = arith.mulf %259, %156 : vector<8x128xf32>
    %261 = arith.addf %255, %260 : vector<8x128xf32>
    %262 = vector.extract_strided_slice %5 {offsets = [5, 0], sizes = [1, 128], strides = [1, 1]} : vector<10x128xf32> to vector<1x128xf32>
    %263 = vector.extract_strided_slice %5 {offsets = [8, 0], sizes = [1, 128], strides = [1, 1]} : vector<10x128xf32> to vector<1x128xf32>
    %264 = vector.extract_strided_slice %7 {offsets = [15, 0], sizes = [1, 128], strides = [1, 1]} : vector<30x128xf32> to vector<1x128xf32>
    %265 = vector.extract_strided_slice %7 {offsets = [16, 0], sizes = [1, 128], strides = [1, 1]} : vector<30x128xf32> to vector<1x128xf32>
    %266 = vector.broadcast %262 : vector<1x128xf32> to vector<8x128xf32>
    %267 = arith.subf %3, %266 : vector<8x128xf32>
    %268 = vector.broadcast %264 : vector<1x128xf32> to vector<8x128xf32>
    %269 = arith.mulf %267, %268 : vector<8x128xf32>
    %270 = arith.mulf %269, %156 : vector<8x128xf32>
    %271 = vector.broadcast %263 : vector<1x128xf32> to vector<8x128xf32>
    %272 = arith.subf %271, %3 : vector<8x128xf32>
    %273 = vector.broadcast %265 : vector<1x128xf32> to vector<8x128xf32>
    %274 = arith.mulf %272, %273 : vector<8x128xf32>
    %275 = arith.mulf %274, %171 : vector<8x128xf32>
    %276 = arith.addf %270, %275 : vector<8x128xf32>
    %277 = vector.extract_strided_slice %5 {offsets = [6, 0], sizes = [1, 128], strides = [1, 1]} : vector<10x128xf32> to vector<1x128xf32>
    %278 = vector.extract_strided_slice %5 {offsets = [9, 0], sizes = [1, 128], strides = [1, 1]} : vector<10x128xf32> to vector<1x128xf32>
    %279 = vector.extract_strided_slice %7 {offsets = [16, 0], sizes = [1, 128], strides = [1, 1]} : vector<30x128xf32> to vector<1x128xf32>
    %280 = vector.extract_strided_slice %7 {offsets = [17, 0], sizes = [1, 128], strides = [1, 1]} : vector<30x128xf32> to vector<1x128xf32>
    %281 = vector.broadcast %277 : vector<1x128xf32> to vector<8x128xf32>
    %282 = arith.subf %3, %281 : vector<8x128xf32>
    %283 = vector.broadcast %279 : vector<1x128xf32> to vector<8x128xf32>
    %284 = arith.mulf %282, %283 : vector<8x128xf32>
    %285 = arith.mulf %284, %171 : vector<8x128xf32>
    %286 = vector.broadcast %278 : vector<1x128xf32> to vector<8x128xf32>
    %287 = arith.subf %286, %3 : vector<8x128xf32>
    %288 = vector.broadcast %280 : vector<1x128xf32> to vector<8x128xf32>
    %289 = arith.mulf %287, %288 : vector<8x128xf32>
    %290 = arith.mulf %289, %186 : vector<8x128xf32>
    %291 = arith.addf %285, %290 : vector<8x128xf32>
    %292 = vector.extract_strided_slice %5 {offsets = [0, 0], sizes = [1, 128], strides = [1, 1]} : vector<10x128xf32> to vector<1x128xf32>
    %293 = vector.extract_strided_slice %5 {offsets = [4, 0], sizes = [1, 128], strides = [1, 1]} : vector<10x128xf32> to vector<1x128xf32>
    %294 = vector.extract_strided_slice %7 {offsets = [20, 0], sizes = [1, 128], strides = [1, 1]} : vector<30x128xf32> to vector<1x128xf32>
    %295 = vector.extract_strided_slice %7 {offsets = [21, 0], sizes = [1, 128], strides = [1, 1]} : vector<30x128xf32> to vector<1x128xf32>
    %296 = vector.broadcast %292 : vector<1x128xf32> to vector<8x128xf32>
    %297 = arith.subf %3, %296 : vector<8x128xf32>
    %298 = vector.broadcast %294 : vector<1x128xf32> to vector<8x128xf32>
    %299 = arith.mulf %297, %298 : vector<8x128xf32>
    %300 = arith.mulf %299, %201 : vector<8x128xf32>
    %301 = vector.broadcast %293 : vector<1x128xf32> to vector<8x128xf32>
    %302 = arith.subf %301, %3 : vector<8x128xf32>
    %303 = vector.broadcast %295 : vector<1x128xf32> to vector<8x128xf32>
    %304 = arith.mulf %302, %303 : vector<8x128xf32>
    %305 = arith.mulf %304, %216 : vector<8x128xf32>
    %306 = arith.addf %300, %305 : vector<8x128xf32>
    %307 = vector.extract_strided_slice %5 {offsets = [1, 0], sizes = [1, 128], strides = [1, 1]} : vector<10x128xf32> to vector<1x128xf32>
    %308 = vector.extract_strided_slice %5 {offsets = [5, 0], sizes = [1, 128], strides = [1, 1]} : vector<10x128xf32> to vector<1x128xf32>
    %309 = vector.extract_strided_slice %7 {offsets = [21, 0], sizes = [1, 128], strides = [1, 1]} : vector<30x128xf32> to vector<1x128xf32>
    %310 = vector.extract_strided_slice %7 {offsets = [22, 0], sizes = [1, 128], strides = [1, 1]} : vector<30x128xf32> to vector<1x128xf32>
    %311 = vector.broadcast %307 : vector<1x128xf32> to vector<8x128xf32>
    %312 = arith.subf %3, %311 : vector<8x128xf32>
    %313 = vector.broadcast %309 : vector<1x128xf32> to vector<8x128xf32>
    %314 = arith.mulf %312, %313 : vector<8x128xf32>
    %315 = arith.mulf %314, %216 : vector<8x128xf32>
    %316 = vector.broadcast %308 : vector<1x128xf32> to vector<8x128xf32>
    %317 = arith.subf %316, %3 : vector<8x128xf32>
    %318 = vector.broadcast %310 : vector<1x128xf32> to vector<8x128xf32>
    %319 = arith.mulf %317, %318 : vector<8x128xf32>
    %320 = arith.mulf %319, %231 : vector<8x128xf32>
    %321 = arith.addf %315, %320 : vector<8x128xf32>
    %322 = vector.extract_strided_slice %5 {offsets = [2, 0], sizes = [1, 128], strides = [1, 1]} : vector<10x128xf32> to vector<1x128xf32>
    %323 = vector.extract_strided_slice %5 {offsets = [6, 0], sizes = [1, 128], strides = [1, 1]} : vector<10x128xf32> to vector<1x128xf32>
    %324 = vector.extract_strided_slice %7 {offsets = [22, 0], sizes = [1, 128], strides = [1, 1]} : vector<30x128xf32> to vector<1x128xf32>
    %325 = vector.extract_strided_slice %7 {offsets = [23, 0], sizes = [1, 128], strides = [1, 1]} : vector<30x128xf32> to vector<1x128xf32>
    %326 = vector.broadcast %322 : vector<1x128xf32> to vector<8x128xf32>
    %327 = arith.subf %3, %326 : vector<8x128xf32>
    %328 = vector.broadcast %324 : vector<1x128xf32> to vector<8x128xf32>
    %329 = arith.mulf %327, %328 : vector<8x128xf32>
    %330 = arith.mulf %329, %231 : vector<8x128xf32>
    %331 = vector.broadcast %323 : vector<1x128xf32> to vector<8x128xf32>
    %332 = arith.subf %331, %3 : vector<8x128xf32>
    %333 = vector.broadcast %325 : vector<1x128xf32> to vector<8x128xf32>
    %334 = arith.mulf %332, %333 : vector<8x128xf32>
    %335 = arith.mulf %334, %246 : vector<8x128xf32>
    %336 = arith.addf %330, %335 : vector<8x128xf32>
    %337 = vector.extract_strided_slice %5 {offsets = [3, 0], sizes = [1, 128], strides = [1, 1]} : vector<10x128xf32> to vector<1x128xf32>
    %338 = vector.extract_strided_slice %5 {offsets = [7, 0], sizes = [1, 128], strides = [1, 1]} : vector<10x128xf32> to vector<1x128xf32>
    %339 = vector.extract_strided_slice %7 {offsets = [23, 0], sizes = [1, 128], strides = [1, 1]} : vector<30x128xf32> to vector<1x128xf32>
    %340 = vector.extract_strided_slice %7 {offsets = [24, 0], sizes = [1, 128], strides = [1, 1]} : vector<30x128xf32> to vector<1x128xf32>
    %341 = vector.broadcast %337 : vector<1x128xf32> to vector<8x128xf32>
    %342 = arith.subf %3, %341 : vector<8x128xf32>
    %343 = vector.broadcast %339 : vector<1x128xf32> to vector<8x128xf32>
    %344 = arith.mulf %342, %343 : vector<8x128xf32>
    %345 = arith.mulf %344, %246 : vector<8x128xf32>
    %346 = vector.broadcast %338 : vector<1x128xf32> to vector<8x128xf32>
    %347 = arith.subf %346, %3 : vector<8x128xf32>
    %348 = vector.broadcast %340 : vector<1x128xf32> to vector<8x128xf32>
    %349 = arith.mulf %347, %348 : vector<8x128xf32>
    %350 = arith.mulf %349, %261 : vector<8x128xf32>
    %351 = arith.addf %345, %350 : vector<8x128xf32>
    %352 = vector.extract_strided_slice %5 {offsets = [4, 0], sizes = [1, 128], strides = [1, 1]} : vector<10x128xf32> to vector<1x128xf32>
    %353 = vector.extract_strided_slice %5 {offsets = [8, 0], sizes = [1, 128], strides = [1, 1]} : vector<10x128xf32> to vector<1x128xf32>
    %354 = vector.extract_strided_slice %7 {offsets = [24, 0], sizes = [1, 128], strides = [1, 1]} : vector<30x128xf32> to vector<1x128xf32>
    %355 = vector.extract_strided_slice %7 {offsets = [25, 0], sizes = [1, 128], strides = [1, 1]} : vector<30x128xf32> to vector<1x128xf32>
    %356 = vector.broadcast %352 : vector<1x128xf32> to vector<8x128xf32>
    %357 = arith.subf %3, %356 : vector<8x128xf32>
    %358 = vector.broadcast %354 : vector<1x128xf32> to vector<8x128xf32>
    %359 = arith.mulf %357, %358 : vector<8x128xf32>
    %360 = arith.mulf %359, %261 : vector<8x128xf32>
    %361 = vector.broadcast %353 : vector<1x128xf32> to vector<8x128xf32>
    %362 = arith.subf %361, %3 : vector<8x128xf32>
    %363 = vector.broadcast %355 : vector<1x128xf32> to vector<8x128xf32>
    %364 = arith.mulf %362, %363 : vector<8x128xf32>
    %365 = arith.mulf %364, %276 : vector<8x128xf32>
    %366 = arith.addf %360, %365 : vector<8x128xf32>
    %367 = vector.extract_strided_slice %5 {offsets = [5, 0], sizes = [1, 128], strides = [1, 1]} : vector<10x128xf32> to vector<1x128xf32>
    %368 = vector.extract_strided_slice %5 {offsets = [9, 0], sizes = [1, 128], strides = [1, 1]} : vector<10x128xf32> to vector<1x128xf32>
    %369 = vector.extract_strided_slice %7 {offsets = [25, 0], sizes = [1, 128], strides = [1, 1]} : vector<30x128xf32> to vector<1x128xf32>
    %370 = vector.extract_strided_slice %7 {offsets = [26, 0], sizes = [1, 128], strides = [1, 1]} : vector<30x128xf32> to vector<1x128xf32>
    %371 = vector.broadcast %367 : vector<1x128xf32> to vector<8x128xf32>
    %372 = arith.subf %3, %371 : vector<8x128xf32>
    %373 = vector.broadcast %369 : vector<1x128xf32> to vector<8x128xf32>
    %374 = arith.mulf %372, %373 : vector<8x128xf32>
    %375 = arith.mulf %374, %276 : vector<8x128xf32>
    %376 = vector.broadcast %368 : vector<1x128xf32> to vector<8x128xf32>
    %377 = arith.subf %376, %3 : vector<8x128xf32>
    %378 = vector.broadcast %370 : vector<1x128xf32> to vector<8x128xf32>
    %379 = arith.mulf %377, %378 : vector<8x128xf32>
    %380 = arith.mulf %379, %291 : vector<8x128xf32>
    %381 = arith.addf %375, %380 : vector<8x128xf32>
    %382 = arith.truncf %306 : vector<8x128xf32> to vector<8x128xbf16>
    %c0_8 = arith.constant 0 : index
    %c0_9 = arith.constant 0 : index
    %383 = vector.load %arg9[%c0_8, %c0_9] : memref<8x768xbf16, #tpu.memory_space<vmem>>, vector<8x128xbf16>
    tpu.vector_store %arg9[%c0_8, %c0_9], %382 {strides = array<i32>} : memref<8x768xbf16, #tpu.memory_space<vmem>>, vector<8x128xbf16>,
    %384 = arith.truncf %321 : vector<8x128xf32> to vector<8x128xbf16>
    %c0_10 = arith.constant 0 : index
    %c128 = arith.constant 128 : index
    %385 = vector.load %arg9[%c0_10, %c128] : memref<8x768xbf16, #tpu.memory_space<vmem>>, vector<8x128xbf16>
    tpu.vector_store %arg9[%c0_10, %c128], %384 {strides = array<i32>} : memref<8x768xbf16, #tpu.memory_space<vmem>>, vector<8x128xbf16>,
    %386 = arith.truncf %336 : vector<8x128xf32> to vector<8x128xbf16>
    %c0_11 = arith.constant 0 : index
    %c256 = arith.constant 256 : index
    %387 = vector.load %arg9[%c0_11, %c256] : memref<8x768xbf16, #tpu.memory_space<vmem>>, vector<8x128xbf16>
    tpu.vector_store %arg9[%c0_11, %c256], %386 {strides = array<i32>} : memref<8x768xbf16, #tpu.memory_space<vmem>>, vector<8x128xbf16>,
    %388 = arith.truncf %351 : vector<8x128xf32> to vector<8x128xbf16>
    %c0_12 = arith.constant 0 : index
    %c384 = arith.constant 384 : index
    %389 = vector.load %arg9[%c0_12, %c384] : memref<8x768xbf16, #tpu.memory_space<vmem>>, vector<8x128xbf16>
    tpu.vector_store %arg9[%c0_12, %c384], %388 {strides = array<i32>} : memref<8x768xbf16, #tpu.memory_space<vmem>>, vector<8x128xbf16>,
    %390 = arith.truncf %366 : vector<8x128xf32> to vector<8x128xbf16>
    %c0_13 = arith.constant 0 : index
    %c512 = arith.constant 512 : index
    %391 = vector.load %arg9[%c0_13, %c512] : memref<8x768xbf16, #tpu.memory_space<vmem>>, vector<8x128xbf16>
    tpu.vector_store %arg9[%c0_13, %c512], %390 {strides = array<i32>} : memref<8x768xbf16, #tpu.memory_space<vmem>>, vector<8x128xbf16>,
    %392 = arith.truncf %381 : vector<8x128xf32> to vector<8x128xbf16>
    %c0_14 = arith.constant 0 : index
    %c640 = arith.constant 640 : index
    %393 = vector.load %arg9[%c0_14, %c640] : memref<8x768xbf16, #tpu.memory_space<vmem>>, vector<8x128xbf16>
    tpu.vector_store %arg9[%c0_14, %c640], %392 {strides = array<i32>} : memref<8x768xbf16, #tpu.memory_space<vmem>>, vector<8x128xbf16>,
    %394 = math.absf %3 : vector<8x128xf32>
    %cst = arith.constant 0.000000e+00 : f32
    %395 = vector.broadcast %cst : f32 to vector<8x128xf32>
    %396 = arith.subf %395, %394 : vector<8x128xf32>
    %397 = math.exp %396 : vector<8x128xf32>
    %cst_15 = arith.constant 1.000000e+00 : f32
    %398 = vector.broadcast %cst_15 : f32 to vector<8x128xf32>
    %399 = arith.addf %398, %397 : vector<8x128xf32>
    %400 = tpu.reciprocal %399 {approx = true} : vector<8x128xf32> -> vector<8x128xf32>
    %cst_16 = arith.constant 0.000000e+00 : f32
    %401 = vector.broadcast %cst_16 : f32 to vector<8x128xf32>
    %402 = arith.cmpf oge, %3, %401 : vector<8x128xf32>
    %403 = arith.mulf %397, %400 : vector<8x128xf32>
    %404 = arith.select %402, %400, %403 : vector<8x128xi1>, vector<8x128xf32>
    %405 = arith.mulf %3, %404 : vector<8x128xf32>
    %406 = arith.truncf %405 : vector<8x128xf32> to vector<8x128xbf16>
    %c0_17 = arith.constant 0 : index
    %c0_18 = arith.constant 0 : index
    %c0_19 = arith.constant 0 : index
    %407 = vector.load %arg5[%c0_17, %c0_18, %c0_19] : memref<1x128x128xbf16, #tpu.memory_space<vmem>>, vector<1x128x128xbf16>
    %408 = vector.shape_cast %407 : vector<1x128x128xbf16> to vector<128x128xbf16>
    %cst_20 = arith.constant dense<0.000000e+00> : vector<8x128xf32>
    %409 = tpu.matmul %406, %408, %cst_20 {dimension_numbers = #tpu.dot_dimension_numbers<[1], [0], [0], [1], [0, 0, 1, 1], [], []>} : vector<8x128xbf16>, vector<128x128xbf16>, vector<8x128xf32> -> vector<8x128xf32>
    %c0_21 = arith.constant 0 : index
    %c0_22 = arith.constant 0 : index
    %410 = vector.load %arg9[%c0_21, %c0_22] : memref<8x768xbf16, #tpu.memory_space<vmem>>, vector<8x768xbf16>
    %c0_23 = arith.constant 0 : index
    %c0_24 = arith.constant 0 : index
    %c0_25 = arith.constant 0 : index
    %411 = vector.load %arg6[%c0_23, %c0_24, %c0_25] : memref<1x768x128xbf16, #tpu.memory_space<vmem>>, vector<1x768x128xbf16>
    %412 = vector.shape_cast %411 : vector<1x768x128xbf16> to vector<768x128xbf16>
    %cst_26 = arith.constant dense<0.000000e+00> : vector<8x128xf32>
    %413 = tpu.matmul %410, %412, %cst_26 {dimension_numbers = #tpu.dot_dimension_numbers<[1], [0], [0], [1], [0, 0, 1, 1], [], []>} : vector<8x768xbf16>, vector<768x128xbf16>, vector<8x128xf32> -> vector<8x128xf32>
    %414 = arith.addf %409, %413 : vector<8x128xf32>
    %c0_27 = arith.constant 0 : index
    %c0_28 = arith.constant 0 : index
    %415 = vector.load %arg8[%c0_27, %c0_28] : memref<8x128xf32, #tpu.memory_space<vmem>>, vector<8x128xf32>
    tpu.vector_store %arg8[%c0_27, %c0_28], %414 {strides = array<i32>} : memref<8x128xf32, #tpu.memory_space<vmem>>, vector<8x128xf32>,
    %c1_i32 = arith.constant 1 : i32
    %416 = arith.cmpi eq, %arg1, %c1_i32 : i32
    %417 = arith.extui %416 : i1 to i32
    %c0_i32_29 = arith.constant 0 : i32
    %418 = arith.cmpi ne, %417, %c0_i32_29 : i32
    scf.if %418 {
      %c0_30 = arith.constant 0 : index
      %c0_31 = arith.constant 0 : index
      %419 = vector.load %arg7[%c0_30, %c0_31] : memref<8x128xf32, #tpu.memory_space<vmem>>, vector<8x128xf32>
      tpu.vector_store %arg7[%c0_30, %c0_31], %414 {strides = array<i32>} : memref<8x128xf32, #tpu.memory_space<vmem>>, vector<8x128xf32>,
    } else {
    }
    return
  }
  func.func @transform_0(%arg0: i32, %arg1: i32) -> (i32, i32) {
    %c0_i32 = arith.constant 0 : i32
    %c0_i32_0 = arith.constant 0 : i32
    return %arg0, %c0_i32 : i32, i32
  }
  func.func @transform_1(%arg0: i32, %arg1: i32) -> (i32, i32, i32) {
    %c0_i32 = arith.constant 0 : i32
    %c0_i32_0 = arith.constant 0 : i32
    %c0_i32_1 = arith.constant 0 : i32
    return %arg1, %c0_i32, %c0_i32_0 : i32, i32, i32
  }
  func.func @transform_2(%arg0: i32, %arg1: i32) -> (i32, i32, i32) {
    %c0_i32 = arith.constant 0 : i32
    %c0_i32_0 = arith.constant 0 : i32
    %c0_i32_1 = arith.constant 0 : i32
    return %arg1, %c0_i32, %c0_i32_0 : i32, i32, i32
  }
  func.func @transform_3(%arg0: i32, %arg1: i32) -> (i32, i32, i32) {
    %c0_i32 = arith.constant 0 : i32
    %c0_i32_0 = arith.constant 0 : i32
    %c0_i32_1 = arith.constant 0 : i32
    return %arg1, %c0_i32, %c0_i32_0 : i32, i32, i32
  }
  func.func @transform_4(%arg0: i32, %arg1: i32) -> (i32, i32, i32) {
    %c0_i32 = arith.constant 0 : i32
    %c0_i32_0 = arith.constant 0 : i32
    %c0_i32_1 = arith.constant 0 : i32
    return %arg1, %c0_i32, %c0_i32_0 : i32, i32, i32
  }
  func.func @transform_5(%arg0: i32, %arg1: i32) -> (i32, i32) {
    %c0_i32 = arith.constant 0 : i32
    %c0_i32_0 = arith.constant 0 : i32
    return %arg0, %c0_i32 : i32, i32
  }
}

</mosaic_0001>

<bundles_post_ra>
// kernel: tpu_custom_call.1
= control target key start
LH: loop header
LB: loop body
LE: loop exit
PB: predicated region body
PF: predicated region fallthrough
CT: control target
= control target key end

     0   :  { %10 = vsyncpa [#allocation5], 0  ;;  %s2362_s0 = inlined_call_operand.vmem [shape: f32[8,128], index: 0, kind: input, shape index: {}]   ;;  %s2363_s1 = inlined_call_operand.vmem [shape: f32[2,10,128], index: 1, kind: input, shape index: {}]   ;;  %s2364_s2 = inlined_call_operand.vmem [shape: f32[2,30,128], index: 2, kind: input, shape index: {}]   ;;  %s2365_s3 = inlined_call_operand.vmem [shape: bf16[2,128,128], index: 3, kind: input, shape index: {}]   ;;  %s2366_s4 = inlined_call_operand.hbm [shape: bf16[2,768,128], index: 4, kind: input, shape index: {}]   ;;  %s2367_s5 = inlined_call_operand.hbm [shape: f32[8,128], index: 5, kind: output, shape index: {}]  }
   0x1   :  { %12 = vsyncpa [#allocation5 + $0x1], 0 }
   0x2   :  { %13 = vsyncpa [#allocation6], 0  ;;  %s1901_s18 = smov 0   ;;  %s1903_s19 = smov 0  }
   0x3   :  { %s1905_s20 = smov 0   ;;  %s1907_s21 = smov 0  }
   0x4   :  { %s1909_s22 = smov 0   ;;  %s1911_s23 = smov 0  }
   0x5 LB: > { %s1417_s24 = sadd.s32 4294967295, %s1863_s23   ;;  %s28_s25 = sadd.s32 1, %s1859_s22  ;;  %s1863_s23 = sphi %s1911_s23, %s19_s23   ;;  %s1859_s22 = sphi %s1909_s22, %s2375_s22   ;;  %s1855_s21 = sphi %s1907_s21, %s2374_s21   ;;  %s1851_s20 = sphi %s1905_s20, %s2373_s20   ;;  %s1847_s19 = sphi %s1903_s19, %s2372_s19   ;;  %s1843_s18 = sphi %s1901_s18, %s2371_s18  }
   0x6   : > { %p29_p0 = scmp.ge.s32.totalorder %s28_s25, 2  ;;  %s142_s26 = sadd.s32 1, %s1851_s20 }
   0x7   : > { %p149_p1 = scmp.ne.s32.totalorder %s1851_s20, %s1847_s19  ;;  %p150_p2 = scmp.eq.s32.totalorder %s1863_s23, 0 }
   0x8   : > { %s2377_s25 = smov (%p29_p0, %s28_s25), 0  ;;  %p155_p4 = scmp.ne.s32.totalorder %s1847_s19, %s1843_s18 }
   0x9   : > { %p151_p3 = por %p150_p2, %p149_p1  ;;  %s139_s27 = ssub.s32 %s1859_s22, %s2377_s25 }
   0xa   : > { %p156_p5 = scmp.eq.s32.totalorder %s1417_s24, 0  ;;  %p140_p6 = scmp.eq.s32.totalorder %s139_s27, 0 }
   0xb   : > { %p1641_p8 = scmp.lt.s32.totalorder %s1863_s23, 2  ;;  %s236_s30 = sand.u32 1, %s1851_s20  }
   0xc   : > { %p1942_p7 = por %p156_p5, %p155_p4  ;;  %s1629_s6 = smul.u32 6144, %s1859_s22 }
   0xd   : > { %s1948_s29 = scalar_select %p140_p6, %s1851_s20, %s142_s26  }
   0xe   : > { %s1628_s7 = smul.u32 384, %s236_s30  ;;  %s246_s10 = scalar_lea.hbm %s2366_s4, %s1629_s6 }
   0xf   : > { %p1955_p9 = pnand %p1641_p8, %p151_p3  ;;  %s237_s14 = scalar_lea.sflag [#allocation5], %s236_s30 }
  0x10   : > { %s240_s12 = scalar_lea.vmem [#allocation4], %s1628_s7  ;;  %s1865_s16 = smov [#allocation4]  }
  0x11   : > { %s247_s13 = sshll.u32 %s240_s12, 4  ;;  %p1759_p10 = pneg %p1955_p9  ;;  %s248_s13 = int_to_ptr.vmem [resolvable:$true] %s247_s13 }
  0x12   : > { %s1770_s15 = scalar_lea.vmem %s248_s13, 6144  ;;  %s1775_s17 = sshll.u32 %s1865_s16, 4  ;;  %s1776_s17 = int_to_ptr.vmem [resolvable:$false] %s1775_s17 }
  0x13   : > { %p1771_p11 = scmp.ne.s32.totalorder %s248_s13, %s1770_s15  ;;  %s1777_s18 = scalar_lea.vmem %s1776_s17, 12288 }
  0x14   : > { %p1778_p0 = scmp.lt.s32.totalorder %s248_s13, %s1776_s17  ;;  %p1779_p1 = scmp.lt.s32.totalorder %s1777_s18, %s1770_s15 }
  0x15   : > { %p1773_p12 = pnand %p1771_p11, %p1759_p10 }
  0x16   : > { %p1780_p2 = por %p1779_p1, %p1778_p0 }
  0x17   : > { %p1774_p13 = pneg %p1773_p12 }
  0x19   : > { %p1781_p3 = pnand %p1780_p2, %p1774_p13 }
  0x1b   : > { %1784 = shalt.err (!%p1781_p3)
}
  0x1c   : > { %s1866_s26 = smov 64   ;;  %s1867_s27 = smov 4  }
  0x1d   : > { %1640 = dma.hbm_to_vmem [thread:$0]  (!%p1955_p9), %s246_s10, 6144, %s248_s13, %s237_s14, %s1866_s26, %s1866_s26, %s1867_s27  }
  0x1e   : > { %p1422_p4 = scmp.ge.s32.totalorder %s1863_s23, 1  ;;  %p255_p5 = scmp.lt.s32.totalorder %s1863_s23, 3 }
  0x20   : > { %p256_p6 = pnand %p1422_p4, %p255_p5 }
  0x21   : > { %s261_s30 = sand.u32 (!%p256_p6), 1, %s1847_s19  }
  0x22   : > { %259 = sbr.rel (%p256_p6) target bundleno = 365 (0x16d), region = 40  ;;  %s262_s7 = scalar_lea.sflag (!%p256_p6), [#allocation5], %s261_s30 }
  0x23   : > { %s1630_s6 = smul.u32 (!%p256_p6), 384, %s261_s30 }
  0x25   : > { %s1966_s8 = scalar_lea.vmem (!%p256_p6), [#allocation4], %s1630_s6 }
  0x27   : > { %1834 = dma.done.wait (%p1942_p7), %s262_s7, 6144  }
  0x28   : > { %1836 = vsyncadd (%p1942_p7), %s262_s7, 4294961152  ;;  %p310_p8 = scmp.lt.s32.totalorder %s1855_s21, 1  ;;  %p1429_p7 = scmp.ne.s32.totalorder %s1855_s21, 0 }
  0x2a   : > { %s311_s9 = scalar_select %p310_p8, %s1855_s21, 1 }
  0x2b   : > { %329 = sbr.rel (%p1429_p7) target bundleno = 50 (0x32), region = 48 }
  0x2c   : > { %s1507_s10 = sshll.u32 %s311_s9, 4  ;;  %s1508_s11 = sshll.u32 %s311_s9, 5 }
  0x2d   : > { %s1977_s14 = scalar_lea.vmem %s2363_s1, %s1507_s10  ;;  %s1982_s17 = scalar_lea.vmem %s2364_s2, %s1508_s11 }
  0x2e   : > { %s1509_s18 = sshll.u32 %s311_s9, 6 }
  0x2f   : > { %s1987_s27 = scalar_lea.vmem %s2365_s3, %s1509_s18 }
  0x30   : > { %v330_v0 = vld [vmem:[%s2362_s0] sm:$0xff] }
  0x31   : > { %331 = vst [vmem:[#allocation2] sm:$0xff] %v330_v0 }
  0x32 PF: > { %v1697_v1 = vld [vmem:[%s1966_s8 + $0x78] sm:$0xff]   ;;  %v1701_v5 = vld [vmem:[%s1966_s8 + $0x70] sm:$0xff]   ;;  %v1705_v9 = vld [vmem:[%s1966_s8 + $0x68] sm:$0xff]   ;;  %v339_v19 = vlaneseq  ;;  %v1868_v53 = vmov 0.0   ;;  %vm1869_vm10 = vmmov 0   ;;  %p1502_p9 = scmp.ne.s32.totalorder %s1855_s21, 1 }
  0x33   : > { %v1698_v2 = vld [vmem:[%s1966_s8 + $0xf8] sm:$0xff]   ;;  %1533 = vmatprep.subr.bf16.mxu0 %v1697_v1  ;;  %v1702_v6 = vld [vmem:[%s1966_s8 + $0xf0] sm:$0xff]   ;;  %v1706_v10 = vld [vmem:[%s1966_s8 + $0xe8] sm:$0xff]  }
  0x34   : > { %v1699_v3 = vld [vmem:[%s1966_s8 + $0x38] sm:$0xff]   ;;  %1555 = vmatprep.subr.bf16.mxu1 %v1698_v2  ;;  %v1703_v7 = vld [vmem:[%s1966_s8 + $0x30] sm:$0xff]   ;;  %v1707_v11 = vld [vmem:[%s1966_s8 + $0x28] sm:$0xff]   ;;  %v340_v24 = vshrl.u32 %v339_v19, 7 }
  0x35   : > { %v1700_v4 = vld [vmem:[%s1966_s8 + $0xb8] sm:$0xff]   ;;  %1534 = vmatpush3.bf16.msra.mxu0 %v1699_v3  ;;  %v1704_v8 = vld [vmem:[%s1966_s8 + $0xb0] sm:$0xff]   ;;  %v1708_v12 = vld [vmem:[%s1966_s8 + $0xa8] sm:$0xff]  }
  0x36   : > { %1556 = vmatpush3.bf16.msra.mxu1 %v1700_v4  ;;  %1535 = vmatprep.subr.bf16.mxu0 %v1701_v5  ;;  %v1709_v13 = vld [vmem:[%s1966_s8 + $0x60] sm:$0xff]   ;;  %v1713_v17 = vld [vmem:[%s1966_s8 + $0x58] sm:$0xff]   ;;  %v1717_v22 = vld [vmem:[%s1966_s8 + $0x50] sm:$0xff]   ;;  %v2019_v29 = vsub.s32 0, %v340_v24  ;;  %v2022_v31 = vsub.s32 1, %v340_v24  ;;  %v2025_v33 = vsub.s32 2, %v340_v24 }
  0x37   : > { %1557 = vmatprep.subr.bf16.mxu1 %v1702_v6  ;;  %v1710_v14 = vld [vmem:[%s1966_s8 + $0xe0] sm:$0xff]   ;;  %v1714_v18 = vld [vmem:[%s1966_s8 + $0xd8] sm:$0xff]   ;;  %v1718_v23 = vld [vmem:[%s1966_s8 + $0xd0] sm:$0xff]   ;;  %v362_v35 = vsub.s32 3, %v340_v24  ;;  %v2029_v37 = vsub.s32 4, %v340_v24  ;;  %v2032_v39 = vsub.s32 5, %v340_v24 }
  0x38   : > { %v1711_v15 = vld [vmem:[%s1966_s8 + $0x20] sm:$0xff]   ;;  %v1715_v20 = vld [vmem:[%s1966_s8 + $0x18] sm:$0xff]   ;;  %v1719_v25 = vld [vmem:[%s1966_s8 + $0x10] sm:$0xff]   ;;  %v2043_v44 = vsub.s32 6, %v340_v24  ;;  %v2068_v52 = vsub.s32 7, %v340_v24 }
  0x39   : > { %1536 = vmatpush3.bf16.msra.mxu0 %v1703_v7  ;;  %v1712_v16 = vld [vmem:[%s1966_s8 + $0xa0] sm:$0xff]   ;;  %v1716_v21 = vld [vmem:[%s1966_s8 + $0x98] sm:$0xff]   ;;  %v1720_v26 = vld [vmem:[%s1966_s8 + $0x90] sm:$0xff]  }
  0x3a   : > { %1558 = vmatpush3.bf16.msra.mxu1 %v1704_v8  ;;  %1537 = vmatprep.subr.bf16.mxu0 %v1705_v9  ;;  %v1721_v27 = vld [vmem:[%s1966_s8 + $0x48] sm:$0xff]   ;;  %v1725_v34 = vld [vmem:[%s1966_s8 + $0x40] sm:$0xff]   ;;  %v2035_v41 = vld [vmem:[#allocation2] sm:$0xff] }
  0x3b   : > { %1559 = vmatprep.subr.bf16.mxu1 %v1706_v10  ;;  %v1722_v28 = vld [vmem:[%s1966_s8 + $0xc8] sm:$0xff]   ;;  %v1726_v36 = vld [vmem:[%s1966_s8 + $0xc0] sm:$0xff]   ;;  %v2038_v42 = vld [vmem:[%s1977_s14] sm:$0xff]  ;;  %vm653_vm11 = vcmp.ge.f32.partialorder %v2035_v41, 0.0 }
  0x3c   : > { %v1723_v30 = vld [vmem:[%s1966_s8 + $0x8] sm:$0xff]   ;;  %v1727_v38 = vld [vmem:[%s1966_s8] sm:$0xff]   ;;  %v2041_v43 = vld [vmem:[%s1982_s17] sm:$0xff]  ;;  %v2047_v45 = vrot.slane %v2038_v42, %v2019_v29  ;;  %v349_v46 = vrot.slane %v2038_v42, %v2022_v31  ;;  %v2053_v47 = vrot.slane %v2038_v42, %v2025_v33  ;;  %v363_v48 = vrot.slane %v2038_v42, %v362_v35 }
  0x3d   : > { %1538 = vmatpush3.bf16.msra.mxu0 %v1707_v11  ;;  %v1724_v32 = vld [vmem:[%s1966_s8 + $0x88] sm:$0xff]   ;;  %v1728_v40 = vld [vmem:[%s1966_s8 + $0x80] sm:$0xff]   ;;  %v2058_v49 = vrot.slane %v2038_v42, %v2029_v37  ;;  %v2062_v50 = vrot.slane %v2038_v42, %v2032_v39  ;;  %v2066_v51 = vrot.slane %v2041_v43, %v2022_v31  ;;  %v1729_v54 = vld [vmem:[%s1966_s8 + $0x178] sm:$0xff]   ;;  %v440_v60 = vrot.slane %v2041_v43, %v2025_v33 }
  0x3e   : > { %1560 = vmatpush3.bf16.msra.mxu1 %v1708_v12  ;;  %1539 = vmatprep.subr.bf16.mxu0 %v1709_v13  ;;  %vm343_vm0 = vcmp.ge.f32.partialorder %v2035_v41, %v2047_v45  ;;  %vm350_vm1 = vcmp.ge.f32.partialorder %v2035_v41, %v349_v46  ;;  %vm357_vm2 = vcmp.ge.f32.partialorder %v2035_v41, %v2053_v47  ;;  %v2096_v61 = vld [vmem:[%s1982_s17 + $0x8] sm:$0xff] }
  0x3f   : > { %1561 = vmatprep.subr.bf16.mxu1 %v1710_v14  ;;  %vm364_vm3 = vcmp.ge.f32.partialorder %v2035_v41, %v363_v48  ;;  %v2079_v55 = vsel %vm343_vm0, 1.0, %v1868_v53  ;;  %v2082_v56 = vsel %vm350_vm1, 1.0, %v1868_v53  ;;  %v1432_v57 = vsel %vm357_vm2, 1.0, %v1868_v53 }
  0x40   : > { %v1433_v58 = vsel %vm364_vm3, 1.0, %v1868_v53  ;;  %vm371_vm4 = vcmp.ge.f32.partialorder %v2035_v41, %v2058_v49  ;;  %vm378_vm5 = vcmp.ge.f32.partialorder %v2035_v41, %v2062_v50  ;;  %v2091_v59 = vsub.f32 %v2082_v56, %v1432_v57 }
  0x41   : > { %1540 = vmatpush3.bf16.msra.mxu0 %v1711_v15  ;;  %v1434_v62 = vsel %vm371_vm4, 1.0, %v1868_v53  ;;  %v1435_v63 = vsel %vm378_vm5, 1.0, %v1868_v53  ;;  %v411_v0 = vsub.f32 %v1432_v57, %v1433_v58  ;;  %v433_v1 = vsub.f32 %v2035_v41, %v349_v46 }
  0x42   : > { %1562 = vmatpush3.bf16.msra.mxu1 %v1712_v16  ;;  %1541 = vmatprep.subr.bf16.mxu0 %v1713_v17  ;;  %v412_v2 = vsub.f32 %v1433_v58, %v1434_v62  ;;  %v413_v3 = vsub.f32 %v1434_v62, %v1435_v63  ;;  %v2102_v4 = vsub.f32 %v363_v48, %v2035_v41 }
  0x43   : > { %1563 = vmatprep.subr.bf16.mxu1 %v1714_v18  ;;  %v2106_v5 = vsub.f32 %v2035_v41, %v2053_v47  ;;  %v434_v6 = vmul.f32 %v433_v1, %v2066_v51  ;;  %v2111_v7 = vsub.f32 %v2058_v49, %v2035_v41  ;;  %v451_v8 = vrot.slane %v2041_v43, %v362_v35  ;;  %v2130_v18 = vld [vmem:[%s1982_s17 + $0x10] sm:$0xff] }
  0x44   : > { %v2115_v9 = vsub.f32 %v2035_v41, %v363_v48  ;;  %v441_v10 = vmul.f32 %v440_v60, %v2102_v4  ;;  %v458_v12 = vsub.f32 %v2062_v50, %v2035_v41  ;;  %v462_v13 = vrot.slane %v2041_v43, %v2029_v37 }
  0x45   : > { %1542 = vmatpush3.bf16.msra.mxu0 %v1715_v20  ;;  %v445_v11 = vmul.f32 %v2106_v5, %v440_v60  ;;  %v435_v14 = vmul.f32 %v434_v6, %v2091_v59  ;;  %v452_v15 = vmul.f32 %v451_v8, %v2111_v7  ;;  %v2127_v17 = vrot.slane %v2096_v61, %v362_v35 }
  0x46   : > { %1564 = vmatpush3.bf16.msra.mxu1 %v1716_v21  ;;  %1543 = vmatprep.subr.bf16.mxu0 %v1717_v22  ;;  %v456_v16 = vmul.f32 %v2115_v9, %v451_v8  ;;  %v442_v19 = vmul.f32 %v441_v10, %v411_v0  ;;  %v463_v21 = vmul.f32 %v462_v13, %v458_v12 }
  0x47   : > { %1565 = vmatprep.subr.bf16.mxu1 %v1718_v23  ;;  %v446_v20 = vmul.f32 %v445_v11, %v411_v0  ;;  %v528_v22 = vrot.slane %v2096_v61, %v2029_v37  ;;  %v453_v23 = vmul.f32 %v452_v15, %v412_v2  ;;  %v2159_v57 = vrot.slane %v2038_v42, %v2068_v52 }
  0x48   : > { %v457_v24 = vmul.f32 %v456_v16, %v412_v2  ;;  %v409_v11 = vsub.f32 %v2079_v55, %v2082_v56  ;;  %v473_v55 = vrot.slane %v2041_v43, %v2032_v39  ;;  %v2197_v56 = vsub.f32 %v2035_v41, %v2062_v50 }
  0x49   : > { %1544 = vmatpush3.bf16.msra.mxu0 %v1719_v25  ;;  %v523_v25 = vmul.f32 %v2127_v17, %v433_v1  ;;  %vm392_vm7 = vcmp.ge.f32.partialorder %v2035_v41, %v2159_v57 }
  0x4a   : > { %1566 = vmatpush3.bf16.msra.mxu1 %v1720_v26  ;;  %1545 = vmatprep.subr.bf16.mxu0 %v1721_v27  ;;  %v537_v26 = vrot.slane %v2096_v61, %v2032_v39  ;;  %v2137_v27 = vadd.f32 %v442_v19, %v435_v14  ;;  %v1437_v10 = vsel %vm392_vm7, 1.0, %v1868_v53 }
  0x4b   : > { %1567 = vmatprep.subr.bf16.mxu1 %v1722_v28  ;;  %v464_v28 = vmul.f32 %v463_v21, %v413_v3 }
  0x4c   : > { %v538_v35 = vmul.f32 %v537_v26, %v458_v12  ;;  %v524_v48 = vmul.f32 %v523_v25, %v2137_v27  ;;  %v478_v25 = vmul.f32 %v2197_v56, %v473_v55 }
  0x4d   : > { %1546 = vmatpush3.bf16.msra.mxu0 %v1723_v30  ;;  %v529_v30 = vmul.f32 %v528_v22, %v2111_v7  ;;  %v465_v46 = vadd.f32 %v464_v28, %v457_v24  ;;  %v541_v28 = vmul.f32 %v537_v26, %v2115_v9 }
  0x4e   : > { %1568 = vmatpush3.bf16.msra.mxu1 %v1724_v32  ;;  %1547 = vmatprep.subr.bf16.mxu0 %v1725_v34  ;;  %v532_v32 = vmul.f32 %v528_v22, %v2106_v5  ;;  %v454_v34 = vadd.f32 %v453_v23, %v446_v20  ;;  %v484_v22 = vrot.slane %v2041_v43, %v2043_v44 }
  0x4f   : > { %1569 = vmatprep.subr.bf16.mxu1 %v1726_v36  ;;  %v2143_v36 = vrot.slane %v2130_v18, %v2032_v39  ;;  %v539_v2 = vmul.f32 %v538_v35, %v465_v46  ;;  %v2208_v39 = vld [vmem:[%s1982_s17 + $0x18] sm:$0x3f] }
  0x50   : > { %v530_v58 = vmul.f32 %v529_v30, %v454_v34  ;;  %v533_v60 = vmul.f32 %v532_v32, %v454_v34  ;;  %v2217_v32 = vrot.slane %v2096_v61, %v2068_v52 }
  0x51   : > { %1548 = vmatpush3.bf16.msra.mxu0 %v1727_v38  ;;  %v2147_v38 = vrot.slane %v2130_v18, %v2043_v44  ;;  %v590_v62 = vmul.f32 %v2143_v36, %v433_v1  ;;  %v2177_v1 = vsub.f32 %v2035_v41, %v2058_v49 }
  0x52   : > { %1570 = vmatpush3.bf16.msra.mxu1 %v1728_v40  ;;  %1577 = vmatprep.subr.bf16.mxu0 %v1729_v54  ;;  %v2150_v40 = vld [vmem:[%s1977_s14 + $0x8] sm:$0x3]  ;;  %v2155_v54 = vrot.slane %v2038_v42, %v2043_v44  ;;  %v2171_v8 = vadd.f32 %v530_v58, %v524_v48  ;;  %v604_v58 = vrot.slane %v2130_v18, %v2068_v52 }
  0x53   : > { %1608 = vmatprep.subr.bf16.mxu1 %v1868_v53  ;;  %v596_v0 = vmul.f32 %v2147_v38, %v458_v12  ;;  %v2169_v6 = vrot.slane %v2150_v40, %v2019_v29  ;;  %v2181_v12 = vadd.f32 %v539_v2, %v533_v60  ;;  %v467_v16 = vmul.f32 %v2177_v1, %v462_v13 }
  0x54   : > { %vm385_vm6 = vcmp.ge.f32.partialorder %v2035_v41, %v2155_v54  ;;  %v591_v14 = vmul.f32 %v590_v62, %v2171_v8  ;;  %v469_v19 = vsub.f32 %v2155_v54, %v2035_v41  ;;  %v480_v13 = vsub.f32 %v2159_v57, %v2035_v41 }
  0x55   : > { %v1436_v42 = vsel %vm385_vm6, 1.0, %v1868_v53  ;;  %vm399_vm8 = vcmp.ge.f32.partialorder %v2035_v41, %v2169_v6  ;;  %v597_v49 = vmul.f32 %v596_v0, %v2181_v12 }
  0x56   : > { %v414_v15 = vsub.f32 %v1435_v63, %v1436_v42  ;;  %v2191_v20 = vsel %vm399_vm8, 1.0, %v1868_v53  ;;  %v2199_v21 = vsub.f32 %v1436_v42, %v1437_v10  ;;  %v468_v63 = vmul.f32 %v467_v16, %v413_v3 }
  0x57   : > { %v598_v23 = vadd.f32 %v597_v49, %v591_v14  ;;  %v474_v24 = vmul.f32 %v473_v55, %v469_v19  ;;  %v2211_v50 = vsub.f32 %v1437_v10, %v2191_v20  ;;  %v485_v30 = vmul.f32 %v484_v22, %v480_v13 }
  0x58   : > { %v546_v3 = vrot.slane %v2096_v61, %v2043_v44  ;;  %v479_v48 = vmul.f32 %v478_v25, %v414_v15  ;;  %v556_v0 = vmul.f32 %v2217_v32, %v480_v13  ;;  %v542_v44 = vmul.f32 %v541_v28, %v465_v46 }
  0x59   : > { %v1528_v34 = vpack.c.bf16 %v598_v23, %v598_v23  ;;  %v475_v35 = vmul.f32 %v474_v24, %v414_v15  ;;  %v486_v26 = vmul.f32 %v485_v30, %v2199_v21  ;;  %v2226_v42 = vrot.slane %v2208_v39, %v2019_v29 }
  0x5a   : > { %v547_v60 = vmul.f32 %v546_v3, %v469_v19  ;;  %v550_v62 = vmul.f32 %v546_v3, %v2177_v1  ;;  %v418_v10 = vsub.f32 %v2035_v41, %v2047_v45  ;;  %v422_v15 = vrot.slane %v2041_v43, %v2019_v29 }
  0x5b   : > { %1114 = vmatprep.mubr.bf16.mxu0 %v1528_v34  ;;  %v476_v2 = vadd.f32 %v475_v35, %v468_v63  ;;  %v487_v14 = vadd.f32 %v486_v26, %v479_v48  ;;  %v425_v16 = vsub.f32 %v2053_v47, %v2035_v41  ;;  %v513_v49 = vrot.slane %v2096_v61, %v2025_v33 }
  0x5c   : > { %v608_v46 = vmul.f32 %v604_v58, %v2115_v9  ;;  %v614_v23 = vmul.f32 %v2226_v42, %v480_v13  ;;  %v423_v25 = vmul.f32 %v422_v15, %v418_v10  ;;  %v520_v3 = vmul.f32 %v2127_v17, %v2102_v4 }
  0x5d   : > { %v548_v55 = vmul.f32 %v547_v60, %v476_v2  ;;  %v551_v63 = vmul.f32 %v550_v62, %v476_v2  ;;  %v557_v24 = vmul.f32 %v556_v0, %v487_v14  ;;  %v430_v45 = vmul.f32 %v2066_v51, %v425_v16 }
  0x5e   : > { %v514_v28 = vmul.f32 %v513_v49, %v418_v10  ;;  %v580_v47 = vrot.slane %v2130_v18, %v2029_v37  ;;  %v587_v34 = vmul.f32 %v2143_v36, %v2111_v7  ;;  %v424_v9 = vmul.f32 %v423_v25, %v409_v11  ;;  %v1730_v25 = vld [vmem:[%s1966_s8 + $0x138] sm:$0xff]  }
  0x5f   : > { %v549_v30 = vadd.f32 %v548_v55, %v542_v44  ;;  %v2245_v35 = vadd.f32 %v557_v24, %v551_v63  ;;  %v431_v13 = vmul.f32 %v430_v45, %v2091_v59  ;;  %v599_v48 = vmul.f32 %v2147_v38, %v2106_v5 }
  0x60   : > { %v499_v51 = vsub.f32 %v2035_v41, %v2159_v57  ;;  %v521_v4 = vmul.f32 %v520_v3, %v2137_v27  ;;  %v581_v17 = vmul.f32 %v580_v47, %v418_v10  ;;  %v588_v7 = vmul.f32 %v587_v34, %v2171_v8  ;;  %v1731_v10 = vld [vmem:[%s1987_s27 + $0x38] sm:$0xff]  }
  0x61   : > { %v609_v26 = vmul.f32 %v608_v46, %v549_v30  ;;  %v615_v37 = vmul.f32 %v614_v23, %v2245_v35  ;;  %v432_v60 = vadd.f32 %v431_v13, %v424_v9  ;;  %v600_v36 = vmul.f32 %v599_v48, %v2181_v12  ;;  %v1732_v3 = vld [vmem:[%s1966_s8 + $0x170] sm:$0xff]  }
  0x62   : > { %v605_v11 = vmul.f32 %v604_v58, %v469_v19  ;;  %v405_v59 = vrot.slane %v2150_v40, %v2022_v31  ;;  %v488_v5 = vsub.f32 %v2035_v41, %v2155_v54  ;;  %v2262_v38 = vsub.f32 %v2169_v6, %v2035_v41 }
  0x63   : > { %v616_v27 = vadd.f32 %v615_v37, %v609_v26  ;;  %v515_v57 = vmul.f32 %v514_v28, %v432_v60  ;;  %v495_v62 = vrot.slane %v2041_v43, %v2068_v52  ;;  %v506_v8 = vrot.slane %v2096_v61, %v2019_v29  ;;  %v1735_v26 = vld [vmem:[%s1966_s8 + $0x168] sm:$0xff]  }
  0x64   : > { %v606_v12 = vmul.f32 %v605_v11, %v549_v30  ;;  %vm406_vm9 = vcmp.ge.f32.partialorder %v2035_v41, %v405_v59  ;;  %v489_v40 = vmul.f32 %v488_v5, %v484_v22  ;;  %v502_v19 = vsub.f32 %v405_v59, %v2035_v41  ;;  %v1740_v11 = vld [vmem:[%s1987_s27 + $0x20] sm:$0xff]  }
  0x65   : > { %v1530_v54 = vpack.c.bf16 %v616_v27, %v616_v27  ;;  %v522_v58 = vadd.f32 %v521_v4, %v515_v57  ;;  %v1439_v6 = vsel %vm406_vm9, 1.0, %v1868_v53  ;;  %v496_v0 = vmul.f32 %v495_v62, %v2262_v38  ;;  %v1737_v4 = vld [vmem:[%s1987_s27 + $0x28] sm:$0xff]   ;;  %v1741_v57 = vld [vmem:[%s1966_s8 + $0x158] sm:$0xff]  }
  0x66   : > { %v607_v2 = vadd.f32 %v606_v12, %v600_v36  ;;  %v417_v44 = vsub.f32 %v2191_v20, %v1439_v6  ;;  %v490_v43 = vmul.f32 %v489_v40, %v2199_v21  ;;  %v500_v52 = vmul.f32 %v499_v51, %v495_v62  ;;  %v1738_v36 = vld [vmem:[%s1966_s8 + $0x160] sm:$0xff]   ;;  %v1743_v62 = vld [vmem:[%s1987_s27 + $0x18] sm:$0xff]   ;;  %v1746_v40 = vld [vmem:[%s1987_s27 + $0x10] sm:$0xff]  }
  0x67   : > { %1154 = vmatprep.mubr.bf16.mxu1 %v1530_v54  ;;  %v582_v61 = vmul.f32 %v581_v17, %v522_v58  ;;  %v497_v22 = vmul.f32 %v496_v0, %v2211_v50  ;;  %v507_v15 = vmul.f32 %v506_v8, %v502_v19  ;;  %v559_v16 = vmul.f32 %v2217_v32, %v2197_v56  ;;  %v1739_v27 = vld [vmem:[%s1966_s8 + $0x120] sm:$0xff]   ;;  %v1742_v8 = vld [vmem:[%s1966_s8 + $0x118] sm:$0xff]   ;;  %v1744_v12 = vld [vmem:[%s1966_s8 + $0x150] sm:$0xff]  }
  0x68   : > { %v1529_v49 = vpack.c.bf16 %v607_v2, %v607_v2  ;;  %v501_v55 = vmul.f32 %v500_v52, %v2211_v50  ;;  %v564_v20 = vrot.slane %v2130_v18, %v2019_v29  ;;  %v573_v21 = vrot.slane %v2130_v18, %v2022_v31  ;;  %v1734_v29 = vld [vmem:[%s1987_s27 + $0x30] sm:$0xff]   ;;  %v1745_v6 = vld [vmem:[%s1966_s8 + $0x110] sm:$0xff]   ;;  %v1749_v2 = vld [vmem:[%s1987_s27 + $0x8] sm:$0xff]  }
  0x69   : > { %v589_v63 = vadd.f32 %v588_v7, %v582_v61  ;;  %v498_v46 = vadd.f32 %v497_v22, %v490_v43  ;;  %v508_v23 = vmul.f32 %v507_v15, %v417_v44  ;;  %v560_v24 = vmul.f32 %v559_v16, %v487_v14  ;;  %v1736_v7 = vld [vmem:[%s1966_s8 + $0x128] sm:$0xff]  }
  0x6a   : > { %1155 = vmatmul.mubr.bf16.vlgmr.msra.gmra.mxu1 %v1529_v49  ;;  %v565_v45 = vmul.f32 %v564_v20, %v2262_v38  ;;  %v568_v32 = vmul.f32 %v564_v20, %v488_v5  ;;  %v574_v28 = vmul.f32 %v573_v21, %v502_v19  ;;  %v622_v50 = vrot.slane %v2208_v39, %v2022_v31  ;;  %v1747_v0 = vld [vmem:[%s1966_s8 + $0x148] sm:$0xff]  }
  0x6b   : > { %v1527_v30 = vpack.c.bf16 %v589_v63, %v589_v63  ;;  %1609 = vmatpush3.bf16.msra.mxu1 %v1731_v10  ;;  %v509_v47 = vadd.f32 %v508_v23, %v501_v55  ;;  %v631_v18 = vrot.slane %v2208_v39, %v2025_v33  ;;  %1624 = vmatprep.mubr.msk.bf16.mxu1 %vm1869_vm10, %v1868_v53  ;;  %v647_v14 = vand.u32 2147483647, %v2035_v41  ;;  %v1733_v33 = vld [vmem:[%s1966_s8 + $0x130] sm:$0xff]   ;;  %v1751_v10 = vld [vmem:[%s1966_s8 + $0x100] sm:$0xff]  }
  0x6c   : > { %1610 = vmatprep.subr.bf16.mxu1 %v1868_v53  ;;  %v566_v34 = vmul.f32 %v565_v45, %v498_v46  ;;  %v569_v31 = vmul.f32 %v568_v32, %v498_v46  ;;  %v626_v9 = vmul.f32 %v622_v50, %v2197_v56  ;;  %v623_v54 = vmul.f32 %v622_v50, %v2262_v38  ;;  %v1752_v38 = vld [vmem:[%s1987_s27] sm:$0xff]  }
  0x6d   : > { %1115 = vmatmul.mubr.bf16.vlgmr.msra.gmra.mxu0 %v1527_v30  ;;  %v575_v13 = vmul.f32 %v574_v28, %v509_v47  ;;  %v632_v48 = vmul.f32 %v631_v18, %v502_v19  ;;  %v648_v51 = vsub.f32 0.0, %v647_v14  ;;  %v617_v19 = vmul.f32 %v2226_v42, %v2177_v1  ;;  %v1748_v1 = vld [vmem:[%s1966_s8 + $0x108] sm:$0xff]   ;;  %v1750_v42 = vld [vmem:[%s1966_s8 + $0x140] sm:$0xff]  }
  0x6e   : > { %1578 = vmatpush3.bf16.msra.mxu0 %v1730_v25  ;;  %v567_v39 = vadd.f32 %v566_v34, %v560_v24 }
  0x6f   : > { %1579 = vmatprep.subr.bf16.mxu0 %v1732_v3  ;;  %1611 = vmatpush3.bf16.msra.mxu1 %v1734_v29  ;;  %v576_v17 = vadd.f32 %v575_v13, %v569_v31  ;;  %v649_v37 = vmul.f32 1.442695, %v648_v51  ;;  %v618_v43 = vmul.f32 %v617_v19, %v2245_v35 }
  0x70   : > { %1612 = vmatprep.subr.bf16.mxu1 %v1868_v53  ;;  %v627_v56 = vmul.f32 %v626_v9, %v567_v39  ;;  %v624_v52 = vmul.f32 %v623_v54, %v567_v39 }
  0x71   : > { %v633_v60 = vmul.f32 %v632_v48, %v576_v17  ;;  %1753 = vpow2.f32 %v649_v37 }
  0x72   : > { %1580 = vmatpush3.bf16.msra.mxu0 %v1733_v33  ;;  %v625_v61 = vadd.f32 %v624_v52, %v618_v43 }
  0x73   : > { %1581 = vmatprep.subr.bf16.mxu0 %v1735_v26  ;;  %1613 = vmatpush3.bf16.msra.mxu1 %v1737_v4  ;;  %v634_v59 = vadd.f32 %v633_v60, %v627_v56 }
  0x74   : > { %1614 = vmatprep.subr.bf16.mxu1 %v1868_v53  ;;  %v1531_v22 = vpack.c.bf16 %v625_v61, %v625_v61 }
  0x75   : > { %v1532_v5 = vpack.c.bf16 %v634_v59, %v634_v59 }
  0x76   : > { %1582 = vmatpush3.bf16.msra.mxu0 %v1736_v7 }
  0x77   : > { %1583 = vmatprep.subr.bf16.mxu0 %v1738_v36  ;;  %1615 = vmatpush3.bf16.msra.mxu1 %v1740_v11 }
  0x78   : > { %1616 = vmatprep.subr.bf16.mxu1 %v1868_v53  ;;  %1194 = vmatprep.mubr.bf16.mxu0 %v1532_v5 }
  0x7a   : > { %1584 = vmatpush3.bf16.msra.mxu0 %v1739_v27 }
  0x7b   : > { %1585 = vmatprep.subr.bf16.mxu0 %v1741_v57  ;;  %1617 = vmatpush3.bf16.msra.mxu1 %v1743_v62 }
  0x7c   : > { %1618 = vmatprep.subr.bf16.mxu1 %v1868_v53 }
  0x7e   : > { %v1754_v58 = vpop.eup %1753  ;;  %1586 = vmatpush3.bf16.msra.mxu0 %v1742_v8 }
  0x7f   : > { %1587 = vmatprep.subr.bf16.mxu0 %v1744_v12  ;;  %1619 = vmatpush3.bf16.msra.mxu1 %v1746_v40  ;;  %v651_v44 = vadd.f32 1.0, %v1754_v58 }
  0x80   : > { %1620 = vmatprep.subr.bf16.mxu1 %v1868_v53 }
  0x81   : > { %1755 = vrcp.f32 %v651_v44 }
  0x82   : > { %1588 = vmatpush3.bf16.msra.mxu0 %v1745_v6 }
  0x83   : > { %1589 = vmatprep.subr.bf16.mxu0 %v1747_v0  ;;  %1621 = vmatpush3.bf16.msra.mxu1 %v1749_v2 }
  0x84   : > { %1622 = vmatprep.subr.bf16.mxu1 %v1868_v53 }
  0x86   : > { %1590 = vmatpush3.bf16.msra.mxu0 %v1748_v1 }
  0x87   : > { %1591 = vmatprep.subr.bf16.mxu0 %v1750_v42  ;;  %1623 = vmatpush3.bf16.msra.mxu1 %v1752_v38 }
  0x8a   : > { %1592 = vmatpush3.bf16.msra.mxu0 %v1751_v10 }
  0x8d   : > { %1195 = vmatmul.mubr.bf16.vlgmr.msra.gmra.mxu0 %v1531_v22 }
  0x8e   : > { %v1756_v15 = vpop.eup %1755 }
  0x8f   : > { %v654_v35 = vmul.f32 %v1756_v15, %v1754_v58 }
  0x91   : > { %v655_v16 = vsel %vm653_vm11, %v1756_v15, %v654_v35 }
  0x92   : > { %v656_v49 = vmul.f32 %v655_v16, %v2035_v41 }
  0x94   : > { %v657_v55 = vpack.c.bf16 %v656_v49, %v656_v49 }
  0x96   : > { %1625 = vmatmul.mubr.bf16.vlgmr.msra.gmra.mxu1 %v657_v55 }
 0x12a   : > { %v1571_v20 = vpop.f32.mrf.mxu1 }
 0x12c   : > { %v1572_v21 = vpop.f32.mrf.mxu1 }
 0x12d   : > { %v1549_v53 = vpop.f32.mrf.mxu0  ;;  %v1573_v32 = vadd.f32 %v1572_v21, %v1571_v20 }
 0x12e   : > { %v1574_v63 = vpop.f32.mrf.mxu1 }
 0x12f   : > { %v1550_v46 = vpop.f32.mrf.mxu0 }
 0x130   : > { %v1575_v23 = vpop.f32.mrf.mxu1  ;;  %v1551_v45 = vadd.f32 %v1550_v46, %v1549_v53 }
 0x131   : > { %v1552_v24 = vpop.f32.mrf.mxu0 }
 0x132   : > { %v1157_v3 = vadd.f32 %v1573_v32, %v1551_v45 }
 0x133   : > { %v1553_v25 = vpop.f32.mrf.mxu0 }
 0x14d   : > { %v1593_v28 = vpop.f32.mrf.mxu0 }
 0x14f   : > { %v1594_v50 = vpop.f32.mrf.mxu0 }
 0x150   : > { %v1595_v30 = vadd.f32 %v1594_v50, %v1593_v28 }
 0x151   : > { %v1596_v29 = vpop.f32.mrf.mxu0 }
 0x152   : > { %v1197_v47 = vadd.f32 %v1595_v30, %v1157_v3 }
 0x153   : > { %v1597_v18 = vpop.f32.mrf.mxu0 }
 0x156   : > { %v1284_v41 = vpop.f32.mrf.mxu1 }
 0x157   : > { %v1285_v14 = vadd.f32 %v1284_v41, %v1197_v47 }
 0x158   : > { %v1626_v34 = vpop.f32.mrf.mxu1  ;;  %1294 = sbr.rel (%p1502_p9) target bundleno = 350 (0x15e), region = 52 }
 0x159   : > { %1290 = vst [vmem:[#allocation2] sm:$0xff] %v1285_v14 }
 0x15a   : > { %v1287_v31 = vpop.f32.mrf.mxu1 }
 0x15c   : > { %v1627_v9 = vpop.f32.mrf.mxu1 }
 0x15d   : > { %1295 = vst [vmem:[#allocation7] sm:$0xff] %v1285_v14 }
 0x15e PF: > { %p2329_p10 = scmp.eq.s32.totalorder %s1417_s24, 1  ;;  %s1870_s8 = smov [#allocation7]  }
 0x15f   : > { %s1305_s9 = sshll.u32 %s1870_s8, 4  ;;  %s1306_s9 = int_to_ptr.vmem [resolvable:$true] %s1305_s9 }
 0x160   : > { %s1785_s10 = scalar_lea.vmem %s1306_s9, 128  ;;  %p1792_p0 = scmp.lt.s32.totalorder %s1306_s9, %s1306_s9 }
 0x161   : > { %p1786_p11 = scmp.ne.s32.totalorder %s1306_s9, %s1785_s10  ;;  %p1793_p1 = scmp.lt.s32.totalorder %s1785_s10, %s1785_s10 }
 0x163   : > { %p1787_p12 = pnand %p1786_p11, %p2329_p10  ;;  %p1794_p2 = por %p1793_p1, %p1792_p0 }
 0x165   : > { %p1788_p13 = pneg %p1787_p12 }
 0x167   : > { %p1795_p3 = pnand %p1794_p2, %p1788_p13 }
 0x169   : > { %1798 = shalt.err (!%p1795_p3)
}
 0x16a   : > { %1634 = dma.vmem_to_hbm [thread:$0]  (%p2329_p10), %s1306_s9, 128, %s2367_s5, [#allocation6]  }
 0x16b   : > { %1838 = dma.done.wait (%p2329_p10), [#allocation6], 128  }
 0x16c   : > { %1840 = vsyncadd (%p2329_p10), [#allocation6], 4294967168 }
 0x16d PF: > { %s19_s23 = sadd.s32 1, %s1863_s23   ;;  %s2371_s18 = smov %s1847_s19 }
 0x16e   : > { %p16_p4 = scmp.ge.s32.totalorder %s19_s23, 4   ;;  %s2372_s19 = smov %s1851_s20 }
 0x16f   : > { %s2373_s20 = smov %s1948_s29  ;;  %s2374_s21 = smov %s1859_s22 }
 0x170   : > { %s2375_s22 = smov %s2377_s25  ;;  %18 = sbr.rel (!%p16_p4) target bundleno = 5 (0x5), region = 98 }
 0x175   :  { %1318 = vsyncpa [#allocation5], 1 }
 0x176   :  { %1320 = vsyncpa [#allocation5 + $0x1], 1 }
 0x177   :  { %1321 = vsyncpa [#allocation6], 1 }
 0x178   :  { %1323 = vsyncpa [#allocation6 + $0x1], 1 }

</bundles_post_ra>
